<compile_context>
chip_gen: v5e
topology: v5e:2x2
jax: 0.10.0
libtpu: 0.0.40
codegen_flags: <defaults>
</compile_context>

<pallas_src>
import jax
import jax.numpy as jnp
from jax.experimental import pallas as pl
from jax.experimental.pallas import tpu as pltpu  # noqa: F401  (TPU backend)

HIDDEN_SIZE = 32
LAYER_COUNT = 2


# ----------------------------- Pallas kernel ------------------------------- #

def _make_fused_kernel(T, D):
    """Builds the fused kernel for a fixed (static) sequence length / input dim.

    Kernel args: (x_ref, W_0, b_0, ..., W_{L-1}, b_{L-1}, lin_w, lin_b, out_ref)
      x_ref : (B, T*D)  batch_first input, last two dims merged (free reshape)
      W_l   : (D_in_l + H, 4H)  = concat([w_ih_l, w_hh_l], axis=0)
      b_l   : (1, 4H)           = b_ih_l + b_hh_l
      lin_w : (H, 1), lin_b: (1, 1)
      out   : (B, 1)
    """

    def kernel(x_ref, *refs):
        out_ref = refs[-1]
        lin_w_ref = refs[-3]
        lin_b_ref = refs[-2]
        layer_refs = refs[:-3]
        n_layers = len(layer_refs) // 2

        B = x_ref.shape[0]
        H = lin_w_ref.shape[0]

        # Hoisted loads / broadcasts (JAX does not CSE broadcast_in_dim).
        x = x_ref[...]                                             # (B, T*D)
        ws = [layer_refs[2 * l][...] for l in range(n_layers)]
        bs = [jnp.broadcast_to(layer_refs[2 * l + 1][...], (B, 4 * H))
              for l in range(n_layers)]

        h = [jnp.zeros((B, H), jnp.float32) for _ in range(n_layers)]
        c = [jnp.zeros((B, H), jnp.float32) for _ in range(n_layers)]

        def cell(inp, h_prev, c_prev, w, b):
            # One merged MXU matmul per cell: [x_t | h_{t-1}] @ [W_ih ; W_hh].
            gates = jnp.dot(jnp.concatenate([inp, h_prev], axis=1), w,
                            preferred_element_type=jnp.float32) + b  # (B, 4H)
            # Full-width EUP activations on the 128-lane gate vreg, then slice.
            sig = jax.nn.sigmoid(gates)
            tnh = jnp.tanh(gates)
            i = sig[:, 0 * H:1 * H]
            f = sig[:, 1 * H:2 * H]
            g = tnh[:, 2 * H:3 * H]
            o = sig[:, 3 * H:4 * H]
            c_new = f * c_prev + i * g
            h_new = o * jnp.tanh(c_new)
            return h_new, c_new

        # T is a static Python int -> fully unrolled, LLO-visible time loop.
        for t in range(T):
            inp = x[:, t * D:(t + 1) * D]          # (B, D) lane slice, no load
            for l in range(n_layers):
                h[l], c[l] = cell(inp, h[l], c[l], ws[l], bs[l])
                inp = h[l]

        # Final Linear on the top layer's last hidden state (== out[:, -1, :]).
        out_ref[...] = (jnp.dot(h[-1], lin_w_ref[...],
                                preferred_element_type=jnp.float32)
                        + lin_b_ref[...])

    return kernel


# -------------------------------- wrapper ----------------------------------- #

def lstm_model_forward(x, params):
    """x: (B, T, n_input) batch_first, like the PyTorch module. Returns (B,)."""
    B, T, D = x.shape
    x2 = x.reshape(B, T * D)                 # contiguous merge: free, no transpose

    flat = []
    for w, b in params["layers"]:
        flat.extend((w, b))

    out = pl.pallas_call(
        _make_fused_kernel(T, D),
        out_shape=jax.ShapeDtypeStruct((B, 1), jnp.float32),
        # No grid: single invocation; all operands (a few KB) live in VMEM.
    )(x2, *flat, params["lin_w"], params["lin_b"])
    return out.reshape(-1)                   # .view(-1)


# ------------------------------ param init ---------------------------------- #

def init_params(key, n_input):
    H = HIDDEN_SIZE
    k = 1.0 / jnp.sqrt(H)
    layers = []
    for layer in range(LAYER_COUNT):
        d_in = n_input if layer == 0 else H
        key, k1, k2, k3, k4 = jax.random.split(key, 5)
        w_ih = jax.random.uniform(k1, (d_in, 4 * H), jnp.float32, -k, k)
        w_hh = jax.random.uniform(k2, (H, 4 * H), jnp.float32, -k, k)
        # torch has separate b_ih and b_hh; their sum is equivalent.
        b = (jax.random.uniform(k3, (1, 4 * H), jnp.float32, -k, k)
             + jax.random.uniform(k4, (1, 4 * H), jnp.float32, -k, k))
        # Pre-concatenate once so the kernel does one matmul per cell.
        layers.append((jnp.concatenate([w_ih, w_hh], axis=0), b))
    key, k5, k6 = jax.random.split(key, 3)
    return {
        "layers": layers,
        "lin_w": jax.random.uniform(k5, (H, 1), jnp.float32, -k, k),
        "lin_b": jax.random.uniform(k6, (1, 1), jnp.float32, -k, k),
    }


# --------------------------- pure-JAX reference ------------------------------ #

def ref_forward(x, params):
    B, T, _ = x.shape
    H = params["lin_w"].shape[0]
    seq = jnp.transpose(x, (1, 0, 2))        # (T, B, D)
    for (w, b) in params["layers"]:
        def step(carry, xt, w=w, b=b):
            h, c = carry
            gates = jnp.concatenate([xt, h], axis=1) @ w + b
            i = jax.nn.sigmoid(gates[:, 0:H])
            f = jax.nn.sigmoid(gates[:, H:2 * H])
            g = jnp.tanh(gates[:, 2 * H:3 * H])
            o = jax.nn.sigmoid(gates[:, 3 * H:4 * H])
            c = f * c + i * g
            h = o * jnp.tanh(c)
            return (h, c), h
        init = (jnp.zeros((B, H), jnp.float32), jnp.zeros((B, H), jnp.float32))
        _, seq = jax.lax.scan(step, init, seq)
    out = seq[-1] @ params["lin_w"] + params["lin_b"]
    return out.reshape(-1)


# ---------------------------------- main ------------------------------------- #

if __name__ == "__main__":
    B, T, N_INPUT = 2, 8, 8
    key = jax.random.PRNGKey(0)
    key, kx = jax.random.split(key)
    x = jax.random.normal(kx, (B, T, N_INPUT), dtype=jnp.float32)

    params = init_params(key, N_INPUT)

    fwd = jax.jit(lstm_model_forward)
    out = jax.block_until_ready(fwd(x, params))
    ref = jax.block_until_ready(ref_forward(x, params))

    assert out.shape == (B,), out.shape
    assert jnp.allclose(out, ref, atol=1e-5, rtol=1e-5), (out, ref)
    print("KERNEL_OK")
</pallas_src>

<mosaic_0001>
module attributes {stable_mosaic.version = 11 : i64} {
  func.func @kernel(%arg0: memref<2x64xf32, #tpu.memory_space<vmem>>, %arg1: memref<40x128xf32, #tpu.memory_space<vmem>>, %arg2: memref<1x128xf32, #tpu.memory_space<vmem>>, %arg3: memref<64x128xf32, #tpu.memory_space<vmem>>, %arg4: memref<1x128xf32, #tpu.memory_space<vmem>>, %arg5: memref<32x1xf32, #tpu.memory_space<vmem>>, %arg6: memref<1x1xf32, #tpu.memory_space<vmem>>, %arg7: memref<2x1xf32, #tpu.memory_space<vmem>>) attributes {dimension_semantics = [], scalar_prefetch = 0 : i64, scratch_operands = 0 : i64, tpu.core_type = #tpu.core_type<tc>} {
    %c0 = arith.constant 0 : index
    %c0_0 = arith.constant 0 : index
    %0 = vector.load %arg0[%c0, %c0_0] : memref<2x64xf32, #tpu.memory_space<vmem>>, vector<2x64xf32>
    %c0_1 = arith.constant 0 : index
    %c0_2 = arith.constant 0 : index
    %1 = vector.load %arg1[%c0_1, %c0_2] : memref<40x128xf32, #tpu.memory_space<vmem>>, vector<40x128xf32>
    %c0_3 = arith.constant 0 : index
    %c0_4 = arith.constant 0 : index
    %2 = vector.load %arg3[%c0_3, %c0_4] : memref<64x128xf32, #tpu.memory_space<vmem>>, vector<64x128xf32>
    %c0_5 = arith.constant 0 : index
    %c0_6 = arith.constant 0 : index
    %3 = vector.load %arg2[%c0_5, %c0_6] : memref<1x128xf32, #tpu.memory_space<vmem>>, vector<1x128xf32>
    %4 = vector.shape_cast %3 : vector<1x128xf32> to vector<1x128xf32>
    %5 = vector.broadcast %4 : vector<1x128xf32> to vector<2x128xf32>
    %c0_7 = arith.constant 0 : index
    %c0_8 = arith.constant 0 : index
    %6 = vector.load %arg4[%c0_7, %c0_8] : memref<1x128xf32, #tpu.memory_space<vmem>>, vector<1x128xf32>
    %7 = vector.shape_cast %6 : vector<1x128xf32> to vector<1x128xf32>
    %8 = vector.broadcast %7 : vector<1x128xf32> to vector<2x128xf32>
    %cst = arith.constant 0.000000e+00 : f32
    %9 = vector.broadcast %cst : f32 to vector<2x32xf32>
    %cst_9 = arith.constant 0.000000e+00 : f32
    %10 = vector.broadcast %cst_9 : f32 to vector<2x32xf32>
    %cst_10 = arith.constant 0.000000e+00 : f32
    %11 = vector.broadcast %cst_10 : f32 to vector<2x32xf32>
    %cst_11 = arith.constant 0.000000e+00 : f32
    %12 = vector.broadcast %cst_11 : f32 to vector<2x32xf32>
    %13 = vector.extract_strided_slice %0 {offsets = [0, 0], sizes = [2, 8], strides = [1, 1]} : vector<2x64xf32> to vector<2x8xf32>
    %14 = tpu.concatenate %13, %9 in 1 : vector<2x8xf32>, vector<2x32xf32> -> vector<2x40xf32>
    %cst_12 = arith.constant dense<0.000000e+00> : vector<2x128xf32>
    %15 = tpu.matmul %14, %1, %cst_12 {dimension_numbers = #tpu.dot_dimension_numbers<[1], [0], [0], [1], [0, 0, 1, 1], [], []>} : vector<2x40xf32>, vector<40x128xf32>, vector<2x128xf32> -> vector<2x128xf32>
    %16 = arith.addf %15, %5 : vector<2x128xf32>
    %17 = arith.negf %16 : vector<2x128xf32>
    %18 = math.exp %17 : vector<2x128xf32>
    %cst_13 = arith.constant 1.000000e+00 : f32
    %19 = vector.broadcast %cst_13 : f32 to vector<2x128xf32>
    %20 = arith.addf %19, %18 : vector<2x128xf32>
    %21 = arith.divf %19, %20 : vector<2x128xf32>
    %22 = math.tanh %16 : vector<2x128xf32>
    %23 = vector.extract_strided_slice %21 {offsets = [0, 0], sizes = [2, 32], strides = [1, 1]} : vector<2x128xf32> to vector<2x32xf32>
    %24 = vector.extract_strided_slice %21 {offsets = [0, 32], sizes = [2, 32], strides = [1, 1]} : vector<2x128xf32> to vector<2x32xf32>
    %25 = vector.extract_strided_slice %22 {offsets = [0, 64], sizes = [2, 32], strides = [1, 1]} : vector<2x128xf32> to vector<2x32xf32>
    %26 = vector.extract_strided_slice %21 {offsets = [0, 96], sizes = [2, 32], strides = [1, 1]} : vector<2x128xf32> to vector<2x32xf32>
    %27 = arith.mulf %24, %11 : vector<2x32xf32>
    %28 = arith.mulf %23, %25 : vector<2x32xf32>
    %29 = arith.addf %27, %28 : vector<2x32xf32>
    %30 = math.tanh %29 : vector<2x32xf32>
    %31 = arith.mulf %26, %30 : vector<2x32xf32>
    %32 = tpu.concatenate %31, %10 in 1 : vector<2x32xf32>, vector<2x32xf32> -> vector<2x64xf32>
    %cst_14 = arith.constant dense<0.000000e+00> : vector<2x128xf32>
    %33 = tpu.matmul %32, %2, %cst_14 {dimension_numbers = #tpu.dot_dimension_numbers<[1], [0], [0], [1], [0, 0, 1, 1], [], []>} : vector<2x64xf32>, vector<64x128xf32>, vector<2x128xf32> -> vector<2x128xf32>
    %34 = arith.addf %33, %8 : vector<2x128xf32>
    %35 = arith.negf %34 : vector<2x128xf32>
    %36 = math.exp %35 : vector<2x128xf32>
    %cst_15 = arith.constant 1.000000e+00 : f32
    %37 = vector.broadcast %cst_15 : f32 to vector<2x128xf32>
    %38 = arith.addf %37, %36 : vector<2x128xf32>
    %39 = arith.divf %37, %38 : vector<2x128xf32>
    %40 = math.tanh %34 : vector<2x128xf32>
    %41 = vector.extract_strided_slice %39 {offsets = [0, 0], sizes = [2, 32], strides = [1, 1]} : vector<2x128xf32> to vector<2x32xf32>
    %42 = vector.extract_strided_slice %39 {offsets = [0, 32], sizes = [2, 32], strides = [1, 1]} : vector<2x128xf32> to vector<2x32xf32>
    %43 = vector.extract_strided_slice %40 {offsets = [0, 64], sizes = [2, 32], strides = [1, 1]} : vector<2x128xf32> to vector<2x32xf32>
    %44 = vector.extract_strided_slice %39 {offsets = [0, 96], sizes = [2, 32], strides = [1, 1]} : vector<2x128xf32> to vector<2x32xf32>
    %45 = arith.mulf %42, %12 : vector<2x32xf32>
    %46 = arith.mulf %41, %43 : vector<2x32xf32>
    %47 = arith.addf %45, %46 : vector<2x32xf32>
    %48 = math.tanh %47 : vector<2x32xf32>
    %49 = arith.mulf %44, %48 : vector<2x32xf32>
    %50 = vector.extract_strided_slice %0 {offsets = [0, 8], sizes = [2, 8], strides = [1, 1]} : vector<2x64xf32> to vector<2x8xf32>
    %51 = tpu.concatenate %50, %31 in 1 : vector<2x8xf32>, vector<2x32xf32> -> vector<2x40xf32>
    %cst_16 = arith.constant dense<0.000000e+00> : vector<2x128xf32>
    %52 = tpu.matmul %51, %1, %cst_16 {dimension_numbers = #tpu.dot_dimension_numbers<[1], [0], [0], [1], [0, 0, 1, 1], [], []>} : vector<2x40xf32>, vector<40x128xf32>, vector<2x128xf32> -> vector<2x128xf32>
    %53 = arith.addf %52, %5 : vector<2x128xf32>
    %54 = arith.negf %53 : vector<2x128xf32>
    %55 = math.exp %54 : vector<2x128xf32>
    %cst_17 = arith.constant 1.000000e+00 : f32
    %56 = vector.broadcast %cst_17 : f32 to vector<2x128xf32>
    %57 = arith.addf %56, %55 : vector<2x128xf32>
    %58 = arith.divf %56, %57 : vector<2x128xf32>
    %59 = math.tanh %53 : vector<2x128xf32>
    %60 = vector.extract_strided_slice %58 {offsets = [0, 0], sizes = [2, 32], strides = [1, 1]} : vector<2x128xf32> to vector<2x32xf32>
    %61 = vector.extract_strided_slice %58 {offsets = [0, 32], sizes = [2, 32], strides = [1, 1]} : vector<2x128xf32> to vector<2x32xf32>
    %62 = vector.extract_strided_slice %59 {offsets = [0, 64], sizes = [2, 32], strides = [1, 1]} : vector<2x128xf32> to vector<2x32xf32>
    %63 = vector.extract_strided_slice %58 {offsets = [0, 96], sizes = [2, 32], strides = [1, 1]} : vector<2x128xf32> to vector<2x32xf32>
    %64 = arith.mulf %61, %29 : vector<2x32xf32>
    %65 = arith.mulf %60, %62 : vector<2x32xf32>
    %66 = arith.addf %64, %65 : vector<2x32xf32>
    %67 = math.tanh %66 : vector<2x32xf32>
    %68 = arith.mulf %63, %67 : vector<2x32xf32>
    %69 = tpu.concatenate %68, %49 in 1 : vector<2x32xf32>, vector<2x32xf32> -> vector<2x64xf32>
    %cst_18 = arith.constant dense<0.000000e+00> : vector<2x128xf32>
    %70 = tpu.matmul %69, %2, %cst_18 {dimension_numbers = #tpu.dot_dimension_numbers<[1], [0], [0], [1], [0, 0, 1, 1], [], []>} : vector<2x64xf32>, vector<64x128xf32>, vector<2x128xf32> -> vector<2x128xf32>
    %71 = arith.addf %70, %8 : vector<2x128xf32>
    %72 = arith.negf %71 : vector<2x128xf32>
    %73 = math.exp %72 : vector<2x128xf32>
    %cst_19 = arith.constant 1.000000e+00 : f32
    %74 = vector.broadcast %cst_19 : f32 to vector<2x128xf32>
    %75 = arith.addf %74, %73 : vector<2x128xf32>
    %76 = arith.divf %74, %75 : vector<2x128xf32>
    %77 = math.tanh %71 : vector<2x128xf32>
    %78 = vector.extract_strided_slice %76 {offsets = [0, 0], sizes = [2, 32], strides = [1, 1]} : vector<2x128xf32> to vector<2x32xf32>
    %79 = vector.extract_strided_slice %76 {offsets = [0, 32], sizes = [2, 32], strides = [1, 1]} : vector<2x128xf32> to vector<2x32xf32>
    %80 = vector.extract_strided_slice %77 {offsets = [0, 64], sizes = [2, 32], strides = [1, 1]} : vector<2x128xf32> to vector<2x32xf32>
    %81 = vector.extract_strided_slice %76 {offsets = [0, 96], sizes = [2, 32], strides = [1, 1]} : vector<2x128xf32> to vector<2x32xf32>
    %82 = arith.mulf %79, %47 : vector<2x32xf32>
    %83 = arith.mulf %78, %80 : vector<2x32xf32>
    %84 = arith.addf %82, %83 : vector<2x32xf32>
    %85 = math.tanh %84 : vector<2x32xf32>
    %86 = arith.mulf %81, %85 : vector<2x32xf32>
    %87 = vector.extract_strided_slice %0 {offsets = [0, 16], sizes = [2, 8], strides = [1, 1]} : vector<2x64xf32> to vector<2x8xf32>
    %88 = tpu.concatenate %87, %68 in 1 : vector<2x8xf32>, vector<2x32xf32> -> vector<2x40xf32>
    %cst_20 = arith.constant dense<0.000000e+00> : vector<2x128xf32>
    %89 = tpu.matmul %88, %1, %cst_20 {dimension_numbers = #tpu.dot_dimension_numbers<[1], [0], [0], [1], [0, 0, 1, 1], [], []>} : vector<2x40xf32>, vector<40x128xf32>, vector<2x128xf32> -> vector<2x128xf32>
    %90 = arith.addf %89, %5 : vector<2x128xf32>
    %91 = arith.negf %90 : vector<2x128xf32>
    %92 = math.exp %91 : vector<2x128xf32>
    %cst_21 = arith.constant 1.000000e+00 : f32
    %93 = vector.broadcast %cst_21 : f32 to vector<2x128xf32>
    %94 = arith.addf %93, %92 : vector<2x128xf32>
    %95 = arith.divf %93, %94 : vector<2x128xf32>
    %96 = math.tanh %90 : vector<2x128xf32>
    %97 = vector.extract_strided_slice %95 {offsets = [0, 0], sizes = [2, 32], strides = [1, 1]} : vector<2x128xf32> to vector<2x32xf32>
    %98 = vector.extract_strided_slice %95 {offsets = [0, 32], sizes = [2, 32], strides = [1, 1]} : vector<2x128xf32> to vector<2x32xf32>
    %99 = vector.extract_strided_slice %96 {offsets = [0, 64], sizes = [2, 32], strides = [1, 1]} : vector<2x128xf32> to vector<2x32xf32>
    %100 = vector.extract_strided_slice %95 {offsets = [0, 96], sizes = [2, 32], strides = [1, 1]} : vector<2x128xf32> to vector<2x32xf32>
    %101 = arith.mulf %98, %66 : vector<2x32xf32>
    %102 = arith.mulf %97, %99 : vector<2x32xf32>
    %103 = arith.addf %101, %102 : vector<2x32xf32>
    %104 = math.tanh %103 : vector<2x32xf32>
    %105 = arith.mulf %100, %104 : vector<2x32xf32>
    %106 = tpu.concatenate %105, %86 in 1 : vector<2x32xf32>, vector<2x32xf32> -> vector<2x64xf32>
    %cst_22 = arith.constant dense<0.000000e+00> : vector<2x128xf32>
    %107 = tpu.matmul %106, %2, %cst_22 {dimension_numbers = #tpu.dot_dimension_numbers<[1], [0], [0], [1], [0, 0, 1, 1], [], []>} : vector<2x64xf32>, vector<64x128xf32>, vector<2x128xf32> -> vector<2x128xf32>
    %108 = arith.addf %107, %8 : vector<2x128xf32>
    %109 = arith.negf %108 : vector<2x128xf32>
    %110 = math.exp %109 : vector<2x128xf32>
    %cst_23 = arith.constant 1.000000e+00 : f32
    %111 = vector.broadcast %cst_23 : f32 to vector<2x128xf32>
    %112 = arith.addf %111, %110 : vector<2x128xf32>
    %113 = arith.divf %111, %112 : vector<2x128xf32>
    %114 = math.tanh %108 : vector<2x128xf32>
    %115 = vector.extract_strided_slice %113 {offsets = [0, 0], sizes = [2, 32], strides = [1, 1]} : vector<2x128xf32> to vector<2x32xf32>
    %116 = vector.extract_strided_slice %113 {offsets = [0, 32], sizes = [2, 32], strides = [1, 1]} : vector<2x128xf32> to vector<2x32xf32>
    %117 = vector.extract_strided_slice %114 {offsets = [0, 64], sizes = [2, 32], strides = [1, 1]} : vector<2x128xf32> to vector<2x32xf32>
    %118 = vector.extract_strided_slice %113 {offsets = [0, 96], sizes = [2, 32], strides = [1, 1]} : vector<2x128xf32> to vector<2x32xf32>
    %119 = arith.mulf %116, %84 : vector<2x32xf32>
    %120 = arith.mulf %115, %117 : vector<2x32xf32>
    %121 = arith.addf %119, %120 : vector<2x32xf32>
    %122 = math.tanh %121 : vector<2x32xf32>
    %123 = arith.mulf %118, %122 : vector<2x32xf32>
    %124 = vector.extract_strided_slice %0 {offsets = [0, 24], sizes = [2, 8], strides = [1, 1]} : vector<2x64xf32> to vector<2x8xf32>
    %125 = tpu.concatenate %124, %105 in 1 : vector<2x8xf32>, vector<2x32xf32> -> vector<2x40xf32>
    %cst_24 = arith.constant dense<0.000000e+00> : vector<2x128xf32>
    %126 = tpu.matmul %125, %1, %cst_24 {dimension_numbers = #tpu.dot_dimension_numbers<[1], [0], [0], [1], [0, 0, 1, 1], [], []>} : vector<2x40xf32>, vector<40x128xf32>, vector<2x128xf32> -> vector<2x128xf32>
    %127 = arith.addf %126, %5 : vector<2x128xf32>
    %128 = arith.negf %127 : vector<2x128xf32>
    %129 = math.exp %128 : vector<2x128xf32>
    %cst_25 = arith.constant 1.000000e+00 : f32
    %130 = vector.broadcast %cst_25 : f32 to vector<2x128xf32>
    %131 = arith.addf %130, %129 : vector<2x128xf32>
    %132 = arith.divf %130, %131 : vector<2x128xf32>
    %133 = math.tanh %127 : vector<2x128xf32>
    %134 = vector.extract_strided_slice %132 {offsets = [0, 0], sizes = [2, 32], strides = [1, 1]} : vector<2x128xf32> to vector<2x32xf32>
    %135 = vector.extract_strided_slice %132 {offsets = [0, 32], sizes = [2, 32], strides = [1, 1]} : vector<2x128xf32> to vector<2x32xf32>
    %136 = vector.extract_strided_slice %133 {offsets = [0, 64], sizes = [2, 32], strides = [1, 1]} : vector<2x128xf32> to vector<2x32xf32>
    %137 = vector.extract_strided_slice %132 {offsets = [0, 96], sizes = [2, 32], strides = [1, 1]} : vector<2x128xf32> to vector<2x32xf32>
    %138 = arith.mulf %135, %103 : vector<2x32xf32>
    %139 = arith.mulf %134, %136 : vector<2x32xf32>
    %140 = arith.addf %138, %139 : vector<2x32xf32>
    %141 = math.tanh %140 : vector<2x32xf32>
    %142 = arith.mulf %137, %141 : vector<2x32xf32>
    %143 = tpu.concatenate %142, %123 in 1 : vector<2x32xf32>, vector<2x32xf32> -> vector<2x64xf32>
    %cst_26 = arith.constant dense<0.000000e+00> : vector<2x128xf32>
    %144 = tpu.matmul %143, %2, %cst_26 {dimension_numbers = #tpu.dot_dimension_numbers<[1], [0], [0], [1], [0, 0, 1, 1], [], []>} : vector<2x64xf32>, vector<64x128xf32>, vector<2x128xf32> -> vector<2x128xf32>
    %145 = arith.addf %144, %8 : vector<2x128xf32>
    %146 = arith.negf %145 : vector<2x128xf32>
    %147 = math.exp %146 : vector<2x128xf32>
    %cst_27 = arith.constant 1.000000e+00 : f32
    %148 = vector.broadcast %cst_27 : f32 to vector<2x128xf32>
    %149 = arith.addf %148, %147 : vector<2x128xf32>
    %150 = arith.divf %148, %149 : vector<2x128xf32>
    %151 = math.tanh %145 : vector<2x128xf32>
    %152 = vector.extract_strided_slice %150 {offsets = [0, 0], sizes = [2, 32], strides = [1, 1]} : vector<2x128xf32> to vector<2x32xf32>
    %153 = vector.extract_strided_slice %150 {offsets = [0, 32], sizes = [2, 32], strides = [1, 1]} : vector<2x128xf32> to vector<2x32xf32>
    %154 = vector.extract_strided_slice %151 {offsets = [0, 64], sizes = [2, 32], strides = [1, 1]} : vector<2x128xf32> to vector<2x32xf32>
    %155 = vector.extract_strided_slice %150 {offsets = [0, 96], sizes = [2, 32], strides = [1, 1]} : vector<2x128xf32> to vector<2x32xf32>
    %156 = arith.mulf %153, %121 : vector<2x32xf32>
    %157 = arith.mulf %152, %154 : vector<2x32xf32>
    %158 = arith.addf %156, %157 : vector<2x32xf32>
    %159 = math.tanh %158 : vector<2x32xf32>
    %160 = arith.mulf %155, %159 : vector<2x32xf32>
    %161 = vector.extract_strided_slice %0 {offsets = [0, 32], sizes = [2, 8], strides = [1, 1]} : vector<2x64xf32> to vector<2x8xf32>
    %162 = tpu.concatenate %161, %142 in 1 : vector<2x8xf32>, vector<2x32xf32> -> vector<2x40xf32>
    %cst_28 = arith.constant dense<0.000000e+00> : vector<2x128xf32>
    %163 = tpu.matmul %162, %1, %cst_28 {dimension_numbers = #tpu.dot_dimension_numbers<[1], [0], [0], [1], [0, 0, 1, 1], [], []>} : vector<2x40xf32>, vector<40x128xf32>, vector<2x128xf32> -> vector<2x128xf32>
    %164 = arith.addf %163, %5 : vector<2x128xf32>
    %165 = arith.negf %164 : vector<2x128xf32>
    %166 = math.exp %165 : vector<2x128xf32>
    %cst_29 = arith.constant 1.000000e+00 : f32
    %167 = vector.broadcast %cst_29 : f32 to vector<2x128xf32>
    %168 = arith.addf %167, %166 : vector<2x128xf32>
    %169 = arith.divf %167, %168 : vector<2x128xf32>
    %170 = math.tanh %164 : vector<2x128xf32>
    %171 = vector.extract_strided_slice %169 {offsets = [0, 0], sizes = [2, 32], strides = [1, 1]} : vector<2x128xf32> to vector<2x32xf32>
    %172 = vector.extract_strided_slice %169 {offsets = [0, 32], sizes = [2, 32], strides = [1, 1]} : vector<2x128xf32> to vector<2x32xf32>
    %173 = vector.extract_strided_slice %170 {offsets = [0, 64], sizes = [2, 32], strides = [1, 1]} : vector<2x128xf32> to vector<2x32xf32>
    %174 = vector.extract_strided_slice %169 {offsets = [0, 96], sizes = [2, 32], strides = [1, 1]} : vector<2x128xf32> to vector<2x32xf32>
    %175 = arith.mulf %172, %140 : vector<2x32xf32>
    %176 = arith.mulf %171, %173 : vector<2x32xf32>
    %177 = arith.addf %175, %176 : vector<2x32xf32>
    %178 = math.tanh %177 : vector<2x32xf32>
    %179 = arith.mulf %174, %178 : vector<2x32xf32>
    %180 = tpu.concatenate %179, %160 in 1 : vector<2x32xf32>, vector<2x32xf32> -> vector<2x64xf32>
    %cst_30 = arith.constant dense<0.000000e+00> : vector<2x128xf32>
    %181 = tpu.matmul %180, %2, %cst_30 {dimension_numbers = #tpu.dot_dimension_numbers<[1], [0], [0], [1], [0, 0, 1, 1], [], []>} : vector<2x64xf32>, vector<64x128xf32>, vector<2x128xf32> -> vector<2x128xf32>
    %182 = arith.addf %181, %8 : vector<2x128xf32>
    %183 = arith.negf %182 : vector<2x128xf32>
    %184 = math.exp %183 : vector<2x128xf32>
    %cst_31 = arith.constant 1.000000e+00 : f32
    %185 = vector.broadcast %cst_31 : f32 to vector<2x128xf32>
    %186 = arith.addf %185, %184 : vector<2x128xf32>
    %187 = arith.divf %185, %186 : vector<2x128xf32>
    %188 = math.tanh %182 : vector<2x128xf32>
    %189 = vector.extract_strided_slice %187 {offsets = [0, 0], sizes = [2, 32], strides = [1, 1]} : vector<2x128xf32> to vector<2x32xf32>
    %190 = vector.extract_strided_slice %187 {offsets = [0, 32], sizes = [2, 32], strides = [1, 1]} : vector<2x128xf32> to vector<2x32xf32>
    %191 = vector.extract_strided_slice %188 {offsets = [0, 64], sizes = [2, 32], strides = [1, 1]} : vector<2x128xf32> to vector<2x32xf32>
    %192 = vector.extract_strided_slice %187 {offsets = [0, 96], sizes = [2, 32], strides = [1, 1]} : vector<2x128xf32> to vector<2x32xf32>
    %193 = arith.mulf %190, %158 : vector<2x32xf32>
    %194 = arith.mulf %189, %191 : vector<2x32xf32>
    %195 = arith.addf %193, %194 : vector<2x32xf32>
    %196 = math.tanh %195 : vector<2x32xf32>
    %197 = arith.mulf %192, %196 : vector<2x32xf32>
    %198 = vector.extract_strided_slice %0 {offsets = [0, 40], sizes = [2, 8], strides = [1, 1]} : vector<2x64xf32> to vector<2x8xf32>
    %199 = tpu.concatenate %198, %179 in 1 : vector<2x8xf32>, vector<2x32xf32> -> vector<2x40xf32>
    %cst_32 = arith.constant dense<0.000000e+00> : vector<2x128xf32>
    %200 = tpu.matmul %199, %1, %cst_32 {dimension_numbers = #tpu.dot_dimension_numbers<[1], [0], [0], [1], [0, 0, 1, 1], [], []>} : vector<2x40xf32>, vector<40x128xf32>, vector<2x128xf32> -> vector<2x128xf32>
    %201 = arith.addf %200, %5 : vector<2x128xf32>
    %202 = arith.negf %201 : vector<2x128xf32>
    %203 = math.exp %202 : vector<2x128xf32>
    %cst_33 = arith.constant 1.000000e+00 : f32
    %204 = vector.broadcast %cst_33 : f32 to vector<2x128xf32>
    %205 = arith.addf %204, %203 : vector<2x128xf32>
    %206 = arith.divf %204, %205 : vector<2x128xf32>
    %207 = math.tanh %201 : vector<2x128xf32>
    %208 = vector.extract_strided_slice %206 {offsets = [0, 0], sizes = [2, 32], strides = [1, 1]} : vector<2x128xf32> to vector<2x32xf32>
    %209 = vector.extract_strided_slice %206 {offsets = [0, 32], sizes = [2, 32], strides = [1, 1]} : vector<2x128xf32> to vector<2x32xf32>
    %210 = vector.extract_strided_slice %207 {offsets = [0, 64], sizes = [2, 32], strides = [1, 1]} : vector<2x128xf32> to vector<2x32xf32>
    %211 = vector.extract_strided_slice %206 {offsets = [0, 96], sizes = [2, 32], strides = [1, 1]} : vector<2x128xf32> to vector<2x32xf32>
    %212 = arith.mulf %209, %177 : vector<2x32xf32>
    %213 = arith.mulf %208, %210 : vector<2x32xf32>
    %214 = arith.addf %212, %213 : vector<2x32xf32>
    %215 = math.tanh %214 : vector<2x32xf32>
    %216 = arith.mulf %211, %215 : vector<2x32xf32>
    %217 = tpu.concatenate %216, %197 in 1 : vector<2x32xf32>, vector<2x32xf32> -> vector<2x64xf32>
    %cst_34 = arith.constant dense<0.000000e+00> : vector<2x128xf32>
    %218 = tpu.matmul %217, %2, %cst_34 {dimension_numbers = #tpu.dot_dimension_numbers<[1], [0], [0], [1], [0, 0, 1, 1], [], []>} : vector<2x64xf32>, vector<64x128xf32>, vector<2x128xf32> -> vector<2x128xf32>
    %219 = arith.addf %218, %8 : vector<2x128xf32>
    %220 = arith.negf %219 : vector<2x128xf32>
    %221 = math.exp %220 : vector<2x128xf32>
    %cst_35 = arith.constant 1.000000e+00 : f32
    %222 = vector.broadcast %cst_35 : f32 to vector<2x128xf32>
    %223 = arith.addf %222, %221 : vector<2x128xf32>
    %224 = arith.divf %222, %223 : vector<2x128xf32>
    %225 = math.tanh %219 : vector<2x128xf32>
    %226 = vector.extract_strided_slice %224 {offsets = [0, 0], sizes = [2, 32], strides = [1, 1]} : vector<2x128xf32> to vector<2x32xf32>
    %227 = vector.extract_strided_slice %224 {offsets = [0, 32], sizes = [2, 32], strides = [1, 1]} : vector<2x128xf32> to vector<2x32xf32>
    %228 = vector.extract_strided_slice %225 {offsets = [0, 64], sizes = [2, 32], strides = [1, 1]} : vector<2x128xf32> to vector<2x32xf32>
    %229 = vector.extract_strided_slice %224 {offsets = [0, 96], sizes = [2, 32], strides = [1, 1]} : vector<2x128xf32> to vector<2x32xf32>
    %230 = arith.mulf %227, %195 : vector<2x32xf32>
    %231 = arith.mulf %226, %228 : vector<2x32xf32>
    %232 = arith.addf %230, %231 : vector<2x32xf32>
    %233 = math.tanh %232 : vector<2x32xf32>
    %234 = arith.mulf %229, %233 : vector<2x32xf32>
    %235 = vector.extract_strided_slice %0 {offsets = [0, 48], sizes = [2, 8], strides = [1, 1]} : vector<2x64xf32> to vector<2x8xf32>
    %236 = tpu.concatenate %235, %216 in 1 : vector<2x8xf32>, vector<2x32xf32> -> vector<2x40xf32>
    %cst_36 = arith.constant dense<0.000000e+00> : vector<2x128xf32>
    %237 = tpu.matmul %236, %1, %cst_36 {dimension_numbers = #tpu.dot_dimension_numbers<[1], [0], [0], [1], [0, 0, 1, 1], [], []>} : vector<2x40xf32>, vector<40x128xf32>, vector<2x128xf32> -> vector<2x128xf32>
    %238 = arith.addf %237, %5 : vector<2x128xf32>
    %239 = arith.negf %238 : vector<2x128xf32>
    %240 = math.exp %239 : vector<2x128xf32>
    %cst_37 = arith.constant 1.000000e+00 : f32
    %241 = vector.broadcast %cst_37 : f32 to vector<2x128xf32>
    %242 = arith.addf %241, %240 : vector<2x128xf32>
    %243 = arith.divf %241, %242 : vector<2x128xf32>
    %244 = math.tanh %238 : vector<2x128xf32>
    %245 = vector.extract_strided_slice %243 {offsets = [0, 0], sizes = [2, 32], strides = [1, 1]} : vector<2x128xf32> to vector<2x32xf32>
    %246 = vector.extract_strided_slice %243 {offsets = [0, 32], sizes = [2, 32], strides = [1, 1]} : vector<2x128xf32> to vector<2x32xf32>
    %247 = vector.extract_strided_slice %244 {offsets = [0, 64], sizes = [2, 32], strides = [1, 1]} : vector<2x128xf32> to vector<2x32xf32>
    %248 = vector.extract_strided_slice %243 {offsets = [0, 96], sizes = [2, 32], strides = [1, 1]} : vector<2x128xf32> to vector<2x32xf32>
    %249 = arith.mulf %246, %214 : vector<2x32xf32>
    %250 = arith.mulf %245, %247 : vector<2x32xf32>
    %251 = arith.addf %249, %250 : vector<2x32xf32>
    %252 = math.tanh %251 : vector<2x32xf32>
    %253 = arith.mulf %248, %252 : vector<2x32xf32>
    %254 = tpu.concatenate %253, %234 in 1 : vector<2x32xf32>, vector<2x32xf32> -> vector<2x64xf32>
    %cst_38 = arith.constant dense<0.000000e+00> : vector<2x128xf32>
    %255 = tpu.matmul %254, %2, %cst_38 {dimension_numbers = #tpu.dot_dimension_numbers<[1], [0], [0], [1], [0, 0, 1, 1], [], []>} : vector<2x64xf32>, vector<64x128xf32>, vector<2x128xf32> -> vector<2x128xf32>
    %256 = arith.addf %255, %8 : vector<2x128xf32>
    %257 = arith.negf %256 : vector<2x128xf32>
    %258 = math.exp %257 : vector<2x128xf32>
    %cst_39 = arith.constant 1.000000e+00 : f32
    %259 = vector.broadcast %cst_39 : f32 to vector<2x128xf32>
    %260 = arith.addf %259, %258 : vector<2x128xf32>
    %261 = arith.divf %259, %260 : vector<2x128xf32>
    %262 = math.tanh %256 : vector<2x128xf32>
    %263 = vector.extract_strided_slice %261 {offsets = [0, 0], sizes = [2, 32], strides = [1, 1]} : vector<2x128xf32> to vector<2x32xf32>
    %264 = vector.extract_strided_slice %261 {offsets = [0, 32], sizes = [2, 32], strides = [1, 1]} : vector<2x128xf32> to vector<2x32xf32>
    %265 = vector.extract_strided_slice %262 {offsets = [0, 64], sizes = [2, 32], strides = [1, 1]} : vector<2x128xf32> to vector<2x32xf32>
    %266 = vector.extract_strided_slice %261 {offsets = [0, 96], sizes = [2, 32], strides = [1, 1]} : vector<2x128xf32> to vector<2x32xf32>
    %267 = arith.mulf %264, %232 : vector<2x32xf32>
    %268 = arith.mulf %263, %265 : vector<2x32xf32>
    %269 = arith.addf %267, %268 : vector<2x32xf32>
    %270 = math.tanh %269 : vector<2x32xf32>
    %271 = arith.mulf %266, %270 : vector<2x32xf32>
    %272 = vector.extract_strided_slice %0 {offsets = [0, 56], sizes = [2, 8], strides = [1, 1]} : vector<2x64xf32> to vector<2x8xf32>
    %273 = tpu.concatenate %272, %253 in 1 : vector<2x8xf32>, vector<2x32xf32> -> vector<2x40xf32>
    %cst_40 = arith.constant dense<0.000000e+00> : vector<2x128xf32>
    %274 = tpu.matmul %273, %1, %cst_40 {dimension_numbers = #tpu.dot_dimension_numbers<[1], [0], [0], [1], [0, 0, 1, 1], [], []>} : vector<2x40xf32>, vector<40x128xf32>, vector<2x128xf32> -> vector<2x128xf32>
    %275 = arith.addf %274, %5 : vector<2x128xf32>
    %276 = arith.negf %275 : vector<2x128xf32>
    %277 = math.exp %276 : vector<2x128xf32>
    %cst_41 = arith.constant 1.000000e+00 : f32
    %278 = vector.broadcast %cst_41 : f32 to vector<2x128xf32>
    %279 = arith.addf %278, %277 : vector<2x128xf32>
    %280 = arith.divf %278, %279 : vector<2x128xf32>
    %281 = math.tanh %275 : vector<2x128xf32>
    %282 = vector.extract_strided_slice %280 {offsets = [0, 0], sizes = [2, 32], strides = [1, 1]} : vector<2x128xf32> to vector<2x32xf32>
    %283 = vector.extract_strided_slice %280 {offsets = [0, 32], sizes = [2, 32], strides = [1, 1]} : vector<2x128xf32> to vector<2x32xf32>
    %284 = vector.extract_strided_slice %281 {offsets = [0, 64], sizes = [2, 32], strides = [1, 1]} : vector<2x128xf32> to vector<2x32xf32>
    %285 = vector.extract_strided_slice %280 {offsets = [0, 96], sizes = [2, 32], strides = [1, 1]} : vector<2x128xf32> to vector<2x32xf32>
    %286 = arith.mulf %283, %251 : vector<2x32xf32>
    %287 = arith.mulf %282, %284 : vector<2x32xf32>
    %288 = arith.addf %286, %287 : vector<2x32xf32>
    %289 = math.tanh %288 : vector<2x32xf32>
    %290 = arith.mulf %285, %289 : vector<2x32xf32>
    %291 = tpu.concatenate %290, %271 in 1 : vector<2x32xf32>, vector<2x32xf32> -> vector<2x64xf32>
    %cst_42 = arith.constant dense<0.000000e+00> : vector<2x128xf32>
    %292 = tpu.matmul %291, %2, %cst_42 {dimension_numbers = #tpu.dot_dimension_numbers<[1], [0], [0], [1], [0, 0, 1, 1], [], []>} : vector<2x64xf32>, vector<64x128xf32>, vector<2x128xf32> -> vector<2x128xf32>
    %293 = arith.addf %292, %8 : vector<2x128xf32>
    %294 = arith.negf %293 : vector<2x128xf32>
    %295 = math.exp %294 : vector<2x128xf32>
    %cst_43 = arith.constant 1.000000e+00 : f32
    %296 = vector.broadcast %cst_43 : f32 to vector<2x128xf32>
    %297 = arith.addf %296, %295 : vector<2x128xf32>
    %298 = arith.divf %296, %297 : vector<2x128xf32>
    %299 = math.tanh %293 : vector<2x128xf32>
    %300 = vector.extract_strided_slice %298 {offsets = [0, 0], sizes = [2, 32], strides = [1, 1]} : vector<2x128xf32> to vector<2x32xf32>
    %301 = vector.extract_strided_slice %298 {offsets = [0, 32], sizes = [2, 32], strides = [1, 1]} : vector<2x128xf32> to vector<2x32xf32>
    %302 = vector.extract_strided_slice %299 {offsets = [0, 64], sizes = [2, 32], strides = [1, 1]} : vector<2x128xf32> to vector<2x32xf32>
    %303 = vector.extract_strided_slice %298 {offsets = [0, 96], sizes = [2, 32], strides = [1, 1]} : vector<2x128xf32> to vector<2x32xf32>
    %304 = arith.mulf %301, %269 : vector<2x32xf32>
    %305 = arith.mulf %300, %302 : vector<2x32xf32>
    %306 = arith.addf %304, %305 : vector<2x32xf32>
    %307 = math.tanh %306 : vector<2x32xf32>
    %308 = arith.mulf %303, %307 : vector<2x32xf32>
    %c0_44 = arith.constant 0 : index
    %c0_45 = arith.constant 0 : index
    %309 = vector.load %arg5[%c0_44, %c0_45] : memref<32x1xf32, #tpu.memory_space<vmem>>, vector<32x1xf32>
    %cst_46 = arith.constant dense<0.000000e+00> : vector<2x1xf32>
    %310 = tpu.matmul %308, %309, %cst_46 {dimension_numbers = #tpu.dot_dimension_numbers<[1], [0], [0], [1], [0, 0, 1, 1], [], []>} : vector<2x32xf32>, vector<32x1xf32>, vector<2x1xf32> -> vector<2x1xf32>
    %c0_47 = arith.constant 0 : index
    %c0_48 = arith.constant 0 : index
    %311 = vector.load %arg6[%c0_47, %c0_48] : memref<1x1xf32, #tpu.memory_space<vmem>>, vector<1x1xf32>
    %312 = vector.broadcast %311 : vector<1x1xf32> to vector<2x1xf32>
    %313 = arith.addf %310, %312 : vector<2x1xf32>
    %c0_49 = arith.constant 0 : index
    %c0_50 = arith.constant 0 : index
    %314 = vector.load %arg7[%c0_49, %c0_50] : memref<2x1xf32, #tpu.memory_space<vmem>>, vector<2x1xf32>
    tpu.vector_store %arg7[%c0_49, %c0_50], %313 {strides = array<i32>} : memref<2x1xf32, #tpu.memory_space<vmem>>, vector<2x1xf32>,
    return
  }
}

</mosaic_0001>

<bundles_post_ra>
// kernel: lstm_model_forward.1
= control target key start
LH: loop header
LB: loop body
LE: loop exit
PB: predicated region body
PF: predicated region fallthrough
CT: control target
= control target key end

     0   :  { %s1824_s0 = inlined_call_operand.vmem [shape: f32[2,64], index: 0, kind: input, shape index: {}]   ;;  %s1825_s1 = inlined_call_operand.vmem [shape: f32[40,128], index: 1, kind: input, shape index: {}]   ;;  %s1826_s2 = inlined_call_operand.vmem [shape: f32[1,128], index: 2, kind: input, shape index: {}]   ;;  %s1827_s3 = inlined_call_operand.hbm [shape: f32[64,128], index: 3, kind: input, shape index: {}]   ;;  %s1828_s4 = inlined_call_operand.vmem [shape: f32[1,128], index: 4, kind: input, shape index: {}]   ;;  %s1829_s5 = inlined_call_operand.vmem [shape: f32[32,1], index: 5, kind: input, shape index: {}]   ;;  %s1830_s6 = inlined_call_operand.<no memory space> [shape: f32[1,1], index: 6, kind: input, shape index: {}]   ;;  %s1831_s7 = inlined_call_operand.vmem [shape: f32[2,1], index: 7, kind: output, shape index: {}]  }
   0x1   :  { %v12_v0 = vstv %s1830_s6 }
   0x2   :  { %13 = vst [vmem:[#allocation2] sm:$0x1] %v12_v0 }
   0x3   :  { %14 = vsyncpa [#allocation4], 0  ;;  %s25_s28 = sshll.u32 %s1827_s3, 4  ;;  %s1395_s29 = smov [#allocation3]   ;;  %s26_s28 = int_to_ptr.hbm [resolvable:$true] %s25_s28 }
   0x4   :  { %s27_s30 = sshll.u32 %s1395_s29, 4  ;;  %s1396_s8 = smov 128   ;;  %s28_s30 = int_to_ptr.vmem [resolvable:$true] %s27_s30 }
   0x5   :  { %s1397_s9 = smov 8  }
   0x6   :  { %33 = dma.hbm_to_vmem [thread:$0]  %s26_s28, 1024, %s28_s30, [#allocation4], %s1396_s8, %s1396_s8, %s1397_s9  }
   0x7   :  { %1393 = dma.done.wait [#allocation4], 1024  }
   0x8   :  { %1394 = vsyncadd [#allocation4], 4294966272  ;;  %v1457_v1 = vld [vmem:[%s1825_s1 + $0x20] sm:$0xff]  ;;  %v1462_v2 = vld [vmem:[%s1825_s1 + $0x18] sm:$0xff]  ;;  %vm66_vm0 = vcmask 64512   ;;  %vm68_vm1 = vcmask 326656  }
   0x9   :  { %83 = vmatpush.msra.mxu0 %v1457_v1  ;;  %218 = vmatpush.msra.mxu2 %v1457_v1  ;;  %v1469_v3 = vld [vmem:[%s1825_s1 + $0x10] sm:$0xff]  ;;  %v1476_v4 = vld [vmem:[%s1825_s1 + $0x8] sm:$0xff]  ;;  %v1481_v5 = vld [vmem:[%s1824_s0] sm:$0x3]  ;;  %s1398_s21 = smov 64   ;;  %s1399_s22 = smov 32  }
   0xa   :  { %v1488_v6 = vld [vmem:[%s1825_s1] sm:$0xff]  ;;  %v67_v7 = vsel %vm66_vm0, %v1481_v5, 0.0  ;;  %s1400_s23 = smov 120   ;;  %v1522_v32 = vld [vmem:[#allocation3 + $0x30] sm:$0xff]  ;;  %v1526_v33 = vld [vmem:[#allocation3 + $0x28] sm:$0xff]  ;;  %s1401_s24 = smov 40  }
   0xb   :  { %84 = vmatpush.msra.mxu0 %v1462_v2  ;;  %219 = vmatpush.msra.mxu2 %v1462_v2  ;;  %v1510_v8 = vld [vmem:[%s1826_s2] ss:$0 sm:$0xff]  ;;  %v1537_v36 = vld [vmem:[#allocation3 + $0x20] sm:$0xff]  ;;  %v1543_v38 = vld [vmem:[#allocation3 + $0x10] sm:$0xff]  ;;  %vm133_vm6 = vcmask 261120   ;;  %vm135_vm7 = vcmask 523264  }
   0xc   :  { %v1520_v31 = vld [vmem:[#allocation3 + $0x38] sm:$0xff]  ;;  %v1548_v39 = vld [vmem:[#allocation3 + $0x8] sm:$0xff]  ;;  %v1556_v40 = vld [vmem:[#allocation3] sm:$0xff]  ;;  %s1402_s27 = smov 112   ;;  %s1403_s28 = smov 104  }
   0xd   :  { %85 = vmatpush.msra.mxu0 %v1469_v3  ;;  %220 = vmatpush.msra.mxu2 %v1469_v3  ;;  %v1541_v37 = vld [vmem:[#allocation3 + $0x18] sm:$0xff]  ;;  %s1404_s29 = smov 96   ;;  %s1405_s30 = smov 88  }
   0xe   :  { %147 = vmatpush.msra.mxu1 %v1520_v31  ;;  %284 = vmatpush.msra.mxu3 %v1520_v31  ;;  %v1595_v46 = vld [vmem:[%s1828_s4] ss:$0 sm:$0xff]  ;;  %s1406_s10 = smov 80  }
   0xf   :  { %86 = vmatpush.msra.mxu0 %v1476_v4  ;;  %221 = vmatpush.msra.mxu2 %v1476_v4 }
  0x10   :  { %148 = vmatpush.msra.mxu1 %v1522_v32  ;;  %285 = vmatpush.msra.mxu3 %v1522_v32 }
  0x11   :  { %87 = vmatpush.msra.mxu0 %v1488_v6  ;;  %222 = vmatpush.msra.mxu2 %v1488_v6 }
  0x12   :  { %1189 = vmatmul.msk.f32.vlgmr.msra.gmra.mxu0 %vm68_vm1, %v67_v7  ;;  %149 = vmatpush.msra.mxu1 %v1526_v33 }
  0x13   :  { %354 = vmatpush.msrb.mxu0 %v1457_v1  ;;  %420 = vmatpush.msrb.mxu2 %v1520_v31 }
  0x14   :  { %286 = vmatpush.msra.mxu3 %v1526_v33  ;;  %150 = vmatpush.msra.mxu1 %v1537_v36 }
  0x15   :  { %355 = vmatpush.msrb.mxu0 %v1462_v2  ;;  %421 = vmatpush.msrb.mxu2 %v1522_v32 }
  0x16   :  { %287 = vmatpush.msra.mxu3 %v1537_v36  ;;  %151 = vmatpush.msra.mxu1 %v1541_v37 }
  0x17   :  { %356 = vmatpush.msrb.mxu0 %v1469_v3  ;;  %422 = vmatpush.msrb.mxu2 %v1526_v33 }
  0x18   :  { %288 = vmatpush.msra.mxu3 %v1541_v37  ;;  %152 = vmatpush.msra.mxu1 %v1543_v38 }
  0x19   :  { %357 = vmatpush.msrb.mxu0 %v1476_v4  ;;  %423 = vmatpush.msrb.mxu2 %v1537_v36 }
  0x1a   :  { %289 = vmatpush.msra.mxu3 %v1543_v38  ;;  %153 = vmatpush.msra.mxu1 %v1548_v39 }
  0x1b   :  { %358 = vmatpush.msrb.mxu0 %v1488_v6  ;;  %424 = vmatpush.msrb.mxu2 %v1541_v37 }
  0x1c   :  { %290 = vmatpush.msra.mxu3 %v1548_v39  ;;  %154 = vmatpush.msra.mxu1 %v1556_v40 }
  0x1d   :  { %626 = vmatpush.msra.mxu0 %v1457_v1  ;;  %425 = vmatpush.msrb.mxu2 %v1543_v38 }
  0x1e   :  { %291 = vmatpush.msra.mxu3 %v1556_v40  ;;  %490 = vmatpush.msrb.mxu1 %v1457_v1 }
  0x1f   :  { %627 = vmatpush.msra.mxu0 %v1462_v2  ;;  %426 = vmatpush.msrb.mxu2 %v1548_v39 }
  0x20   :  { %556 = vmatpush.msrb.mxu3 %v1520_v31  ;;  %491 = vmatpush.msrb.mxu1 %v1462_v2 }
  0x21   :  { %628 = vmatpush.msra.mxu0 %v1469_v3  ;;  %427 = vmatpush.msrb.mxu2 %v1556_v40 }
  0x22   :  { %557 = vmatpush.msrb.mxu3 %v1522_v32  ;;  %492 = vmatpush.msrb.mxu1 %v1469_v3 }
  0x23   :  { %629 = vmatpush.msra.mxu0 %v1476_v4 }
  0x24   :  { %558 = vmatpush.msrb.mxu3 %v1526_v33  ;;  %493 = vmatpush.msrb.mxu1 %v1476_v4 }
  0x25   :  { %630 = vmatpush.msra.mxu0 %v1488_v6 }
  0x26   :  { %559 = vmatpush.msrb.mxu3 %v1537_v36  ;;  %494 = vmatpush.msrb.mxu1 %v1488_v6 }
  0x28   :  { %560 = vmatpush.msrb.mxu3 %v1541_v37 }
  0x2a   :  { %561 = vmatpush.msrb.mxu3 %v1543_v38 }
  0x2c   :  { %562 = vmatpush.msrb.mxu3 %v1548_v39 }
  0x2e   :  { %563 = vmatpush.msrb.mxu3 %v1556_v40 }
  0x8f   :  { %v89_v9 = vpop.f32.mrf.mxu0 }
  0x90   :  { %v90_v10 = vadd.f32 %v1510_v8, %v89_v9 }
  0x92   :  { %1238 = vtanh.f32 %v90_v10  ;;  %v1190_v12 = vmul.f32 -1.442695, %v90_v10 }
  0x94   :  { %1240 = vpow2.f32 %v1190_v12 }
  0x98   :  { %v1239_v11 = vpop.eup %1238 }
  0x99   :  { %114 = vrot.lane.b32.xlu0 %v1239_v11, %s1398_s21 }
  0x9a   :  { %v1241_v13 = vpop.eup %1240 }
  0x9b   :  { %v95_v14 = vadd.f32 1.0, %v1241_v13 }
  0x9d   :  { %1242 = vrcp.f32 %v95_v14  ;;  %v107_v20 = vand.u32 2147483648, %v95_v14  ;;  %vm101_vm3 = vweird.f32 %v95_v14  ;;  %v105_v21 = vand.u32 2147483647, %v95_v14 }
  0x9f   :  { %v108_v23 = vor.u32 1.1754944e-38, %v107_v20  ;;  %vm106_vm5 = vcmp.eq.f32.partialorder %v105_v21, 8.507059e+37 }
  0xa3   :  { %v1243_v15 = vpop.eup %1242 }
  0xa4   :  { %v97_v16 = vmul.f32 %v1243_v15, %v95_v14  ;;  %vm102_vm2 = vweird.f32 %v1243_v15 }
  0xa5   :  { %vm103_vm4 = vmor %vm101_vm3, %vm102_vm2 }
  0xa6   :  { %v98_v17 = vsub.f32 1.0, %v97_v16 }
  0xa8   :  { %v99_v18 = vmul.f32 %v1243_v15, %v98_v17 }
  0xaa   :  { %v100_v19 = vadd.f32 %v1243_v15, %v99_v18 }
  0xac   :  { %v104_v22 = vsel %vm103_vm4, %v1243_v15, %v100_v19 }
  0xad   :  { %v109_v25 = vsel %vm106_vm5, %v108_v23, %v104_v22 }
  0xae   :  { %v112_v27 = vmul.f32 0.0, %v109_v25 }
 0x10b   :  { %v115_v24 = vpop.permute.xlu0 %114 }
 0x10c   :  { %v117_v26 = vmul.f32 %v115_v24, %v109_v25 }
 0x10e   :  { %119 = vrot.lane.b32.xlu0 %v117_v26, %s1399_s22 }
 0x180   :  { %v120_v28 = vpop.permute.xlu0 %119 }
 0x181   :  { %v1515_v29 = vadd.f32 %v120_v28, %v112_v27 }
 0x183   :  { %1244 = vtanh.f32 %v1515_v29 }
 0x189   :  { %v1245_v30 = vpop.eup %1244 }
 0x18a   :  { %125 = vrot.lane.b32.xlu1 %v1245_v30, %s1398_s21 }
 0x192   :  { %197 = vrot.lane.b32.xlu1 %v1481_v5, %s1400_s23 }
 0x1fc   :  { %v126_v34 = vpop.permute.xlu1 %125 }
 0x1fd   :  { %v128_v35 = vmul.f32 %v126_v34, %v109_v25 }
 0x1ff   :  { %200 = vrot.lane.b32.xlu2 %v128_v35, %s1401_s24 }
 0x204   :  { %v198_v41 = vpop.permute.xlu1 %197 }
 0x207   :  { %130 = vrot.lane.b32.xlu2 %v128_v35, %s1399_s22 }
 0x259   :  { %v201_v42 = vpop.permute.xlu2 %200 }
 0x25a   :  { %v203_v43 = vsel %vm66_vm0, %v198_v41, %v201_v42 }
 0x25b   :  { %1193 = vmatmul.msk.f32.vlgmr.msra.gmra.mxu2 %vm68_vm1, %v203_v43 }
 0x25c   :  { %762 = vmatpush.msra.mxu2 %v1457_v1 }
 0x25e   :  { %763 = vmatpush.msra.mxu2 %v1462_v2 }
 0x260   :  { %764 = vmatpush.msra.mxu2 %v1469_v3 }
 0x261   :  { %v131_v44 = vpop.permute.xlu2 %130 }
 0x262   :  { %v134_v45 = vsel %vm133_vm6, %v131_v44, 0.0  ;;  %765 = vmatpush.msra.mxu2 %v1476_v4 }
 0x263   :  { %1191 = vmatmul.msk.f32.vlgmr.msra.gmra.mxu1 %vm135_vm7, %v134_v45 }
 0x264   :  { %692 = vmatpush.msra.mxu1 %v1520_v31  ;;  %766 = vmatpush.msra.mxu2 %v1488_v6 }
 0x266   :  { %693 = vmatpush.msra.mxu1 %v1522_v32 }
 0x268   :  { %694 = vmatpush.msra.mxu1 %v1526_v33 }
 0x26a   :  { %695 = vmatpush.msra.mxu1 %v1537_v36 }
 0x26c   :  { %696 = vmatpush.msra.mxu1 %v1541_v37 }
 0x26e   :  { %697 = vmatpush.msra.mxu1 %v1543_v38 }
 0x270   :  { %698 = vmatpush.msra.mxu1 %v1548_v39 }
 0x272   :  { %699 = vmatpush.msra.mxu1 %v1556_v40 }
 0x2de   :  { %v224_v47 = vpop.f32.mrf.mxu2 }
 0x2df   :  { %v225_v48 = vadd.f32 %v1510_v8, %v224_v47 }
 0x2e0   :  { %v156_v49 = vpop.f32.mrf.mxu1 }
 0x2e1   :  { %1246 = vtanh.f32 %v225_v48  ;;  %v157_v50 = vadd.f32 %v1595_v46, %v156_v49  ;;  %v1194_v53 = vmul.f32 -1.442695, %v225_v48 }
 0x2e3   :  { %1248 = vtanh.f32 %v157_v50  ;;  %v1192_v54 = vmul.f32 -1.442695, %v157_v50 }
 0x2e4   :  { %1250 = vpow2.f32 %v1194_v53 }
 0x2e5   :  { %1252 = vpow2.f32 %v1192_v54 }
 0x2e7   :  { %v1247_v51 = vpop.eup %1246 }
 0x2e8   :  { %249 = vrot.lane.b32.xlu1 %v1247_v51, %s1398_s21 }
 0x2e9   :  { %v1249_v52 = vpop.eup %1248 }
 0x2ea   :  { %181 = vrot.lane.b32.xlu0 %v1249_v52, %s1398_s21  ;;  %v1251_v55 = vpop.eup %1250 }
 0x2eb   :  { %v1253_v56 = vpop.eup %1252  ;;  %v230_v57 = vadd.f32 1.0, %v1251_v55 }
 0x2ec   :  { %v162_v58 = vadd.f32 1.0, %v1253_v56 }
 0x2ed   :  { %1254 = vrcp.f32 %v230_v57  ;;  %v242_v11 = vand.u32 2147483648, %v230_v57  ;;  %vm236_vm9 = vweird.f32 %v230_v57  ;;  %v240_v12 = vand.u32 2147483647, %v230_v57 }
 0x2ee   :  { %1256 = vrcp.f32 %v162_v58  ;;  %v174_v15 = vand.u32 2147483648, %v162_v58  ;;  %vm168_vm12 = vweird.f32 %v162_v58  ;;  %v172_v17 = vand.u32 2147483647, %v162_v58 }
 0x2ef   :  { %v243_v16 = vor.u32 1.1754944e-38, %v242_v11  ;;  %vm241_vm13 = vcmp.eq.f32.partialorder %v240_v12, 8.507059e+37 }
 0x2f0   :  { %v175_v22 = vor.u32 1.1754944e-38, %v174_v15  ;;  %vm173_vm15 = vcmp.eq.f32.partialorder %v172_v17, 8.507059e+37 }
 0x2f3   :  { %v1255_v59 = vpop.eup %1254 }
 0x2f4   :  { %v1257_v60 = vpop.eup %1256  ;;  %v232_v61 = vmul.f32 %v1255_v59, %v230_v57  ;;  %vm237_vm8 = vweird.f32 %v1255_v59 }
 0x2f5   :  { %v164_v62 = vmul.f32 %v1257_v60, %v162_v58  ;;  %vm238_vm10 = vmor %vm236_vm9, %vm237_vm8  ;;  %vm169_vm11 = vweird.f32 %v1257_v60 }
 0x2f6   :  { %v233_v63 = vsub.f32 1.0, %v232_v61  ;;  %vm170_vm14 = vmor %vm168_vm12, %vm169_vm11 }
 0x2f7   :  { %v165_v0 = vsub.f32 1.0, %v164_v62 }
 0x2f8   :  { %v234_v7 = vmul.f32 %v1255_v59, %v233_v63 }
 0x2f9   :  { %v166_v9 = vmul.f32 %v1257_v60, %v165_v0 }
 0x2fa   :  { %v235_v10 = vadd.f32 %v1255_v59, %v234_v7 }
 0x2fb   :  { %v167_v13 = vadd.f32 %v1257_v60, %v166_v9 }
 0x2fc   :  { %v239_v14 = vsel %vm238_vm10, %v1255_v59, %v235_v10 }
 0x2fd   :  { %v244_v19 = vsel %vm241_vm13, %v243_v16, %v239_v14  ;;  %v171_v20 = vsel %vm170_vm14, %v1257_v60, %v167_v13 }
 0x2fe   :  { %v176_v24 = vsel %vm173_vm15, %v175_v22, %v171_v20  ;;  %v247_v34 = vmul.f32 %v244_v19, %v1515_v29 }
 0x2ff   :  { %v179_v26 = vmul.f32 0.0, %v176_v24 }
 0x35a   :  { %v250_v18 = vpop.permute.xlu1 %249 }
 0x35b   :  { %v252_v21 = vmul.f32 %v250_v18, %v244_v19 }
 0x35c   :  { %v182_v23 = vpop.permute.xlu0 %181 }
 0x35d   :  { %254 = vrot.lane.b32.xlu0 %v252_v21, %s1399_s22  ;;  %v184_v25 = vmul.f32 %v182_v23, %v176_v24 }
 0x35f   :  { %186 = vrot.lane.b32.xlu2 %v184_v25, %s1399_s22 }
 0x3b9   :  { %v187_v27 = vpop.permute.xlu2 %186 }
 0x3ba   :  { %v1603_v28 = vadd.f32 %v187_v27, %v179_v26 }
 0x3bc   :  { %1258 = vtanh.f32 %v1603_v28 }
 0x3c2   :  { %v1259_v30 = vpop.eup %1258 }
 0x3c3   :  { %192 = vrot.lane.b32.xlu1 %v1259_v30, %s1398_s21 }
 0x3cf   :  { %v255_v35 = vpop.permute.xlu0 %254 }
 0x3d0   :  { %v1608_v41 = vadd.f32 %v255_v35, %v247_v34 }
 0x3d2   :  { %1260 = vtanh.f32 %v1608_v41 }
 0x3d8   :  { %v1261_v42 = vpop.eup %1260 }
 0x3d9   :  { %260 = vrot.lane.b32.xlu2 %v1261_v42, %s1398_s21 }
 0x3e1   :  { %333 = vrot.lane.b32.xlu2 %v1481_v5, %s1402_s27 }
 0x433   :  { %v261_v43 = vpop.permute.xlu2 %260 }
 0x434   :  { %v263_v44 = vmul.f32 %v261_v43, %v244_v19 }
 0x435   :  { %v193_v45 = vpop.permute.xlu1 %192 }
 0x436   :  { %265 = vrot.lane.b32.xlu0 %v263_v44, %s1399_s22  ;;  %v195_v47 = vmul.f32 %v193_v45, %v176_v24 }
 0x438   :  { %269 = vrot.lane.b32.xlu1 %v195_v47, %s1398_s21 }
 0x43b   :  { %v334_v50 = vpop.permute.xlu2 %333 }
 0x43e   :  { %336 = vrot.lane.b32.xlu0 %v263_v44, %s1401_s24 }
 0x4a8   :  { %v266_v29 = vpop.permute.xlu0 %265 }
 0x4aa   :  { %v270_v48 = vpop.permute.xlu1 %269 }
 0x4ab   :  { %v272_v49 = vsel %vm133_vm6, %v266_v29, %v270_v48 }
 0x4ac   :  { %1195 = vmatmul.msk.f32.vlgmr.msra.gmra.mxu3 %vm135_vm7, %v272_v49 }
 0x4ad   :  { %898 = vmatpush.msra.mxu3 %v1457_v1 }
 0x4af   :  { %899 = vmatpush.msra.mxu3 %v1462_v2 }
 0x4b0   :  { %v337_v51 = vpop.permute.xlu0 %336 }
 0x4b1   :  { %v339_v52 = vsel %vm66_vm0, %v334_v50, %v337_v51  ;;  %900 = vmatpush.msra.mxu3 %v1469_v3 }
 0x4b2   :  { %1197 = vmatmul.msk.f32.vlgmr.msrb.gmra.mxu0 %vm68_vm1, %v339_v52 }
 0x4b3   :  { %828 = vmatpush.msrb.mxu0 %v1520_v31  ;;  %901 = vmatpush.msra.mxu3 %v1476_v4 }
 0x4b5   :  { %829 = vmatpush.msrb.mxu0 %v1522_v32  ;;  %902 = vmatpush.msra.mxu3 %v1488_v6 }
 0x4b7   :  { %830 = vmatpush.msrb.mxu0 %v1526_v33 }
 0x4b9   :  { %831 = vmatpush.msrb.mxu0 %v1537_v36 }
 0x4bb   :  { %832 = vmatpush.msrb.mxu0 %v1541_v37 }
 0x4bd   :  { %833 = vmatpush.msrb.mxu0 %v1543_v38 }
 0x4bf   :  { %834 = vmatpush.msrb.mxu0 %v1548_v39 }
 0x4c1   :  { %835 = vmatpush.msrb.mxu0 %v1556_v40 }
 0x52f   :  { %v360_v53 = vpop.f32.mrf.mxu0  ;;  %v293_v54 = vpop.f32.mrf.mxu3 }
 0x530   :  { %v361_v55 = vadd.f32 %v1510_v8, %v360_v53  ;;  %v294_v56 = vadd.f32 %v1595_v46, %v293_v54 }
 0x532   :  { %1262 = vtanh.f32 %v361_v55  ;;  %v1198_v59 = vmul.f32 -1.442695, %v361_v55  ;;  %v1196_v63 = vmul.f32 -1.442695, %v294_v56 }
 0x533   :  { %1264 = vtanh.f32 %v294_v56 }
 0x534   :  { %1266 = vpow2.f32 %v1198_v59 }
 0x538   :  { %v1263_v57 = vpop.eup %1262 }
 0x539   :  { %v1265_v58 = vpop.eup %1264  ;;  %385 = vrot.lane.b32.xlu2 %v1263_v57, %s1398_s21 }
 0x53a   :  { %318 = vrot.lane.b32.xlu1 %v1265_v58, %s1398_s21  ;;  %v1267_v60 = vpop.eup %1266 }
 0x53b   :  { %v366_v61 = vadd.f32 1.0, %v1267_v60 }
 0x53d   :  { %1268 = vrcp.f32 %v366_v61  ;;  %v378_v13 = vand.u32 2147483648, %v366_v61  ;;  %vm372_vm3 = vweird.f32 %v366_v61  ;;  %v376_v14 = vand.u32 2147483647, %v366_v61 }
 0x53e   :  { %1270 = vpow2.f32 %v1196_v63 }
 0x53f   :  { %v379_v16 = vor.u32 1.1754944e-38, %v378_v13  ;;  %vm377_vm5 = vcmp.eq.f32.partialorder %v376_v14, 8.507059e+37 }
 0x543   :  { %v1269_v62 = vpop.eup %1268 }
 0x544   :  { %v368_v0 = vmul.f32 %v1269_v62, %v366_v61  ;;  %v1271_v10 = vpop.eup %1270  ;;  %vm373_vm2 = vweird.f32 %v1269_v62 }
 0x545   :  { %v299_v11 = vadd.f32 1.0, %v1271_v10  ;;  %vm374_vm4 = vmor %vm372_vm3, %vm373_vm2 }
 0x546   :  { %v369_v7 = vsub.f32 1.0, %v368_v0 }
 0x547   :  { %1272 = vrcp.f32 %v299_v11  ;;  %v311_v25 = vand.u32 2147483648, %v299_v11  ;;  %vm305_vm9 = vweird.f32 %v299_v11  ;;  %v309_v26 = vand.u32 2147483647, %v299_v11 }
 0x548   :  { %v370_v9 = vmul.f32 %v1269_v62, %v369_v7 }
 0x549   :  { %v312_v30 = vor.u32 1.1754944e-38, %v311_v25  ;;  %vm310_vm11 = vcmp.eq.f32.partialorder %v309_v26, 8.507059e+37 }
 0x54a   :  { %v371_v12 = vadd.f32 %v1269_v62, %v370_v9 }
 0x54c   :  { %v375_v15 = vsel %vm374_vm4, %v1269_v62, %v371_v12 }
 0x54d   :  { %v380_v18 = vsel %vm377_vm5, %v379_v16, %v375_v15  ;;  %v1273_v20 = vpop.eup %1272 }
 0x54e   :  { %v301_v21 = vmul.f32 %v1273_v20, %v299_v11  ;;  %vm306_vm8 = vweird.f32 %v1273_v20  ;;  %v383_v43 = vmul.f32 %v380_v18, %v1608_v41 }
 0x54f   :  { %vm307_vm10 = vmor %vm305_vm9, %vm306_vm8 }
 0x550   :  { %v302_v22 = vsub.f32 1.0, %v301_v21 }
 0x552   :  { %v303_v23 = vmul.f32 %v1273_v20, %v302_v22 }
 0x554   :  { %v304_v24 = vadd.f32 %v1273_v20, %v303_v23 }
 0x556   :  { %v308_v27 = vsel %vm307_vm10, %v1273_v20, %v304_v24 }
 0x557   :  { %v313_v35 = vsel %vm310_vm11, %v312_v30, %v308_v27 }
 0x558   :  { %v316_v29 = vmul.f32 %v313_v35, %v1603_v28 }
 0x593   :  { %v386_v17 = vpop.permute.xlu2 %385 }
 0x594   :  { %v388_v19 = vmul.f32 %v386_v17, %v380_v18 }
 0x596   :  { %390 = vrot.lane.b32.xlu1 %v388_v19, %s1399_s22 }
 0x5ac   :  { %v319_v34 = vpop.permute.xlu1 %318 }
 0x5ad   :  { %v321_v42 = vmul.f32 %v319_v34, %v313_v35 }
 0x5af   :  { %323 = vrot.lane.b32.xlu0 %v321_v42, %s1399_s22 }
 0x608   :  { %v391_v44 = vpop.permute.xlu1 %390 }
 0x609   :  { %v1640_v45 = vadd.f32 %v391_v44, %v383_v43 }
 0x60b   :  { %1274 = vtanh.f32 %v1640_v45 }
 0x611   :  { %v1275_v47 = vpop.eup %1274 }
 0x612   :  { %396 = vrot.lane.b32.xlu0 %v1275_v47, %s1398_s21 }
 0x61a   :  { %469 = vrot.lane.b32.xlu0 %v1481_v5, %s1403_s28 }
 0x621   :  { %v324_v48 = vpop.permute.xlu0 %323 }
 0x622   :  { %v1646_v49 = vadd.f32 %v324_v48, %v316_v29 }
 0x624   :  { %1276 = vtanh.f32 %v1646_v49 }
 0x62a   :  { %v1277_v50 = vpop.eup %1276 }
 0x62b   :  { %329 = vrot.lane.b32.xlu2 %v1277_v50, %s1398_s21 }
 0x684   :  { %v397_v41 = vpop.permute.xlu0 %396 }
 0x685   :  { %v330_v51 = vpop.permute.xlu2 %329  ;;  %v399_v52 = vmul.f32 %v397_v41, %v380_v18 }
 0x686   :  { %v332_v53 = vmul.f32 %v330_v51, %v313_v35 }
 0x687   :  { %401 = vrot.lane.b32.xlu1 %v399_v52, %s1399_s22 }
 0x688   :  { %405 = vrot.lane.b32.xlu2 %v332_v53, %s1398_s21 }
 0x68c   :  { %v470_v56 = vpop.permute.xlu0 %469 }
 0x68f   :  { %472 = vrot.lane.b32.xlu1 %v399_v52, %s1401_s24 }
 0x6e2   :  { %v406_v54 = vpop.permute.xlu2 %405 }
 0x6f9   :  { %v402_v28 = vpop.permute.xlu1 %401 }
 0x6fa   :  { %v408_v55 = vsel %vm133_vm6, %v402_v28, %v406_v54 }
 0x6fb   :  { %1199 = vmatmul.msk.f32.vlgmr.msrb.gmra.mxu2 %vm135_vm7, %v408_v55 }
 0x6fc   :  { %964 = vmatpush.msrb.mxu2 %v1520_v31 }
 0x6fe   :  { %965 = vmatpush.msrb.mxu2 %v1522_v32 }
 0x700   :  { %966 = vmatpush.msrb.mxu2 %v1526_v33 }
 0x701   :  { %v473_v57 = vpop.permute.xlu1 %472 }
 0x702   :  { %v475_v58 = vsel %vm66_vm0, %v470_v56, %v473_v57  ;;  %967 = vmatpush.msrb.mxu2 %v1537_v36 }
 0x703   :  { %1201 = vmatmul.msk.f32.vlgmr.msrb.gmra.mxu1 %vm68_vm1, %v475_v58 }
 0x704   :  { %1034 = vmatpush.msrb.mxu1 %v1457_v1  ;;  %968 = vmatpush.msrb.mxu2 %v1541_v37 }
 0x706   :  { %1035 = vmatpush.msrb.mxu1 %v1462_v2  ;;  %969 = vmatpush.msrb.mxu2 %v1543_v38 }
 0x708   :  { %1036 = vmatpush.msrb.mxu1 %v1469_v3  ;;  %970 = vmatpush.msrb.mxu2 %v1548_v39 }
 0x70a   :  { %1037 = vmatpush.msrb.mxu1 %v1476_v4  ;;  %971 = vmatpush.msrb.mxu2 %v1556_v40 }
 0x70c   :  { %1038 = vmatpush.msrb.mxu1 %v1488_v6 }
 0x77e   :  { %v429_v59 = vpop.f32.mrf.mxu2 }
 0x77f   :  { %v430_v60 = vadd.f32 %v1595_v46, %v429_v59 }
 0x780   :  { %v496_v1 = vpop.f32.mrf.mxu1 }
 0x781   :  { %1278 = vtanh.f32 %v430_v60  ;;  %v497_v61 = vadd.f32 %v1510_v8, %v496_v1  ;;  %v1200_v6 = vmul.f32 -1.442695, %v430_v60 }
 0x783   :  { %1280 = vtanh.f32 %v497_v61  ;;  %v1202_v62 = vmul.f32 -1.442695, %v497_v61 }
 0x785   :  { %1282 = vpow2.f32 %v1202_v62 }
 0x787   :  { %v1279_v2 = vpop.eup %1278 }
 0x788   :  { %454 = vrot.lane.b32.xlu0 %v1279_v2, %s1398_s21 }
 0x789   :  { %v1281_v3 = vpop.eup %1280 }
 0x78a   :  { %521 = vrot.lane.b32.xlu2 %v1281_v3, %s1398_s21 }
 0x78b   :  { %v1283_v4 = vpop.eup %1282 }
 0x78c   :  { %v502_v63 = vadd.f32 1.0, %v1283_v4 }
 0x78e   :  { %1284 = vrcp.f32 %v502_v63  ;;  %v514_v14 = vand.u32 2147483648, %v502_v63  ;;  %vm508_vm13 = vweird.f32 %v502_v63  ;;  %v512_v15 = vand.u32 2147483647, %v502_v63 }
 0x78f   :  { %1286 = vpow2.f32 %v1200_v6 }
 0x790   :  { %v515_v17 = vor.u32 1.1754944e-38, %v514_v14  ;;  %vm513_vm15 = vcmp.eq.f32.partialorder %v512_v15, 8.507059e+37 }
 0x794   :  { %v1285_v0 = vpop.eup %1284 }
 0x795   :  { %v504_v7 = vmul.f32 %v1285_v0, %v502_v63  ;;  %v1287_v10 = vpop.eup %1286  ;;  %vm509_vm12 = vweird.f32 %v1285_v0 }
 0x796   :  { %v435_v11 = vadd.f32 1.0, %v1287_v10  ;;  %vm510_vm14 = vmor %vm508_vm13, %vm509_vm12 }
 0x797   :  { %v505_v9 = vsub.f32 1.0, %v504_v7 }
 0x798   :  { %1288 = vrcp.f32 %v435_v11  ;;  %v447_v26 = vand.u32 2147483648, %v435_v11  ;;  %vm441_vm3 = vweird.f32 %v435_v11  ;;  %v445_v27 = vand.u32 2147483647, %v435_v11 }
 0x799   :  { %v506_v12 = vmul.f32 %v1285_v0, %v505_v9 }
 0x79a   :  { %v448_v34 = vor.u32 1.1754944e-38, %v447_v26  ;;  %vm446_vm5 = vcmp.eq.f32.partialorder %v445_v27, 8.507059e+37 }
 0x79b   :  { %v507_v13 = vadd.f32 %v1285_v0, %v506_v12 }
 0x79d   :  { %v511_v16 = vsel %vm510_vm14, %v1285_v0, %v507_v13 }
 0x79e   :  { %v1289_v18 = vpop.eup %1288  ;;  %v516_v20 = vsel %vm513_vm15, %v515_v17, %v511_v16 }
 0x79f   :  { %v437_v22 = vmul.f32 %v1289_v18, %v435_v11  ;;  %vm442_vm2 = vweird.f32 %v1289_v18  ;;  %v519_v48 = vmul.f32 %v516_v20, %v1640_v45 }
 0x7a0   :  { %vm443_vm4 = vmor %vm441_vm3, %vm442_vm2 }
 0x7a1   :  { %v438_v23 = vsub.f32 1.0, %v437_v22 }
 0x7a3   :  { %v439_v24 = vmul.f32 %v1289_v18, %v438_v23 }
 0x7a5   :  { %v440_v25 = vadd.f32 %v1289_v18, %v439_v24 }
 0x7a7   :  { %v444_v30 = vsel %vm443_vm4, %v1289_v18, %v440_v25 }
 0x7a8   :  { %v449_v35 = vsel %vm446_vm5, %v448_v34, %v444_v30 }
 0x7a9   :  { %v452_v44 = vmul.f32 %v449_v35, %v1646_v49 }
 0x7e4   :  { %v522_v19 = vpop.permute.xlu2 %521 }
 0x7e5   :  { %v524_v21 = vmul.f32 %v522_v19, %v516_v20 }
 0x7e7   :  { %526 = vrot.lane.b32.xlu1 %v524_v21, %s1399_s22 }
 0x7fa   :  { %v455_v42 = vpop.permute.xlu0 %454 }
 0x7fb   :  { %v457_v43 = vmul.f32 %v455_v42, %v449_v35 }
 0x7fd   :  { %459 = vrot.lane.b32.xlu2 %v457_v43, %s1399_s22 }
 0x805   :  { %605 = vrot.lane.b32.xlu2 %v1481_v5, %s1404_s29 }
 0x857   :  { %v460_v47 = vpop.permute.xlu2 %459 }
 0x858   :  { %v1678_v29 = vadd.f32 %v460_v47, %v452_v44 }
 0x859   :  { %v527_v50 = vpop.permute.xlu1 %526 }
 0x85a   :  { %1290 = vtanh.f32 %v1678_v29  ;;  %v1682_v41 = vadd.f32 %v527_v50, %v519_v48 }
 0x85c   :  { %1292 = vtanh.f32 %v1682_v41 }
 0x85f   :  { %v606_v45 = vpop.permute.xlu2 %605 }
 0x860   :  { %v1291_v51 = vpop.eup %1290 }
 0x861   :  { %465 = vrot.lane.b32.xlu1 %v1291_v51, %s1398_s21 }
 0x862   :  { %v1293_v52 = vpop.eup %1292 }
 0x863   :  { %532 = vrot.lane.b32.xlu0 %v1293_v52, %s1398_s21 }
 0x8d3   :  { %v466_v53 = vpop.permute.xlu1 %465 }
 0x8d4   :  { %v468_v49 = vmul.f32 %v466_v53, %v449_v35 }
 0x8d5   :  { %v533_v54 = vpop.permute.xlu0 %532 }
 0x8d6   :  { %541 = vrot.lane.b32.xlu2 %v468_v49, %s1398_s21  ;;  %v535_v28 = vmul.f32 %v533_v54, %v516_v20 }
 0x8d8   :  { %537 = vrot.lane.b32.xlu1 %v535_v28, %s1399_s22  ;;  %608 = vrot.lane.b32.xlu0 %v535_v28, %s1401_s24 }
 0x930   :  { %v542_v55 = vpop.permute.xlu2 %541 }
 0x94a   :  { %v538_v56 = vpop.permute.xlu1 %537  ;;  %v609_v57 = vpop.permute.xlu0 %608 }
 0x94b   :  { %v544_v58 = vsel %vm133_vm6, %v538_v56, %v542_v55  ;;  %v611_v59 = vsel %vm66_vm0, %v606_v45, %v609_v57 }
 0x94c   :  { %1203 = vmatmul.msk.f32.vlgmr.msrb.gmra.mxu3 %vm135_vm7, %v544_v58  ;;  %1205 = vmatmul.msk.f32.vlgmr.msra.gmra.mxu0 %vm68_vm1, %v611_v59 }
 0x94d   :  { %1100 = vmatpush.msrb.mxu3 %v1520_v31 }
 0x94f   :  { %1101 = vmatpush.msrb.mxu3 %v1522_v32 }
 0x951   :  { %1102 = vmatpush.msrb.mxu3 %v1526_v33 }
 0x953   :  { %1103 = vmatpush.msrb.mxu3 %v1537_v36 }
 0x955   :  { %1104 = vmatpush.msrb.mxu3 %v1541_v37 }
 0x957   :  { %1105 = vmatpush.msrb.mxu3 %v1543_v38 }
 0x959   :  { %1106 = vmatpush.msrb.mxu3 %v1548_v39 }
 0x95b   :  { %1107 = vmatpush.msrb.mxu3 %v1556_v40 }
 0x9c9   :  { %v632_v60 = vpop.f32.mrf.mxu0 }
 0x9ca   :  { %v633_v1 = vadd.f32 %v1510_v8, %v632_v60 }
 0x9cc   :  { %1294 = vtanh.f32 %v633_v1  ;;  %v1206_v36 = vmul.f32 -1.442695, %v633_v1 }
 0x9cf   :  { %v565_v61 = vpop.f32.mrf.mxu3 }
 0x9d0   :  { %v566_v31 = vadd.f32 %v1595_v46, %v565_v61 }
 0x9d2   :  { %v1295_v32 = vpop.eup %1294  ;;  %1296 = vtanh.f32 %v566_v31  ;;  %v1204_v37 = vmul.f32 -1.442695, %v566_v31 }
 0x9d3   :  { %657 = vrot.lane.b32.xlu0 %v1295_v32, %s1398_s21  ;;  %1298 = vpow2.f32 %v1206_v36 }
 0x9d4   :  { %1300 = vpow2.f32 %v1204_v37 }
 0x9d8   :  { %v1297_v33 = vpop.eup %1296 }
 0x9d9   :  { %590 = vrot.lane.b32.xlu1 %v1297_v33, %s1398_s21  ;;  %v1299_v38 = vpop.eup %1298 }
 0x9da   :  { %v638_v39 = vadd.f32 1.0, %v1299_v38  ;;  %v1301_v40 = vpop.eup %1300 }
 0x9db   :  { %v571_v2 = vadd.f32 1.0, %v1301_v40 }
 0x9dc   :  { %1302 = vrcp.f32 %v638_v39  ;;  %v650_v10 = vand.u32 2147483648, %v638_v39  ;;  %vm644_vm9 = vweird.f32 %v638_v39  ;;  %v648_v11 = vand.u32 2147483647, %v638_v39 }
 0x9dd   :  { %1304 = vrcp.f32 %v571_v2  ;;  %v583_v18 = vand.u32 2147483648, %v571_v2  ;;  %vm577_vm13 = vweird.f32 %v571_v2  ;;  %v581_v20 = vand.u32 2147483647, %v571_v2 }
 0x9de   :  { %v651_v14 = vor.u32 1.1754944e-38, %v650_v10  ;;  %vm649_vm11 = vcmp.eq.f32.partialorder %v648_v11, 8.507059e+37 }
 0x9df   :  { %v584_v22 = vor.u32 1.1754944e-38, %v583_v18  ;;  %vm582_vm15 = vcmp.eq.f32.partialorder %v581_v20, 8.507059e+37 }
 0x9e2   :  { %v1303_v3 = vpop.eup %1302 }
 0x9e3   :  { %v640_v62 = vmul.f32 %v1303_v3, %v638_v39  ;;  %v1305_v4 = vpop.eup %1304  ;;  %vm645_vm8 = vweird.f32 %v1303_v3 }
 0x9e4   :  { %v573_v6 = vmul.f32 %v1305_v4, %v571_v2  ;;  %vm646_vm10 = vmor %vm644_vm9, %vm645_vm8  ;;  %vm578_vm12 = vweird.f32 %v1305_v4 }
 0x9e5   :  { %v641_v63 = vsub.f32 1.0, %v640_v62  ;;  %vm579_vm14 = vmor %vm577_vm13, %vm578_vm12 }
 0x9e6   :  { %v574_v7 = vsub.f32 1.0, %v573_v6 }
 0x9e7   :  { %v642_v0 = vmul.f32 %v1303_v3, %v641_v63 }
 0x9e8   :  { %v575_v12 = vmul.f32 %v1305_v4, %v574_v7 }
 0x9e9   :  { %v643_v9 = vadd.f32 %v1303_v3, %v642_v0 }
 0x9ea   :  { %v576_v15 = vadd.f32 %v1305_v4, %v575_v12 }
 0x9eb   :  { %v647_v13 = vsel %vm646_vm10, %v1303_v3, %v643_v9 }
 0x9ec   :  { %v652_v17 = vsel %vm649_vm11, %v651_v14, %v647_v13  ;;  %v580_v21 = vsel %vm579_vm14, %v1305_v4, %v576_v15 }
 0x9ed   :  { %v585_v24 = vsel %vm582_vm15, %v584_v22, %v580_v21  ;;  %v655_v26 = vmul.f32 %v652_v17, %v1682_v41 }
 0x9ee   :  { %v588_v35 = vmul.f32 %v585_v24, %v1678_v29 }
 0xa45   :  { %v658_v16 = vpop.permute.xlu0 %657 }
 0xa46   :  { %v660_v19 = vmul.f32 %v658_v16, %v652_v17  ;;  %v1734_v16 = vld [vmem:[%s1824_s0] sm:$0x3] }
 0xa48   :  { %662 = vrot.lane.b32.xlu2 %v660_v19, %s1399_s22 }
 0xa4b   :  { %v591_v23 = vpop.permute.xlu1 %590 }
 0xa4c   :  { %v593_v25 = vmul.f32 %v591_v23, %v585_v24 }
 0xa4e   :  { %595 = vrot.lane.b32.xlu0 %v593_v25, %s1399_s22 }
 0xa56   :  { %741 = vrot.lane.b32.xlu0 %v1481_v5, %s1405_s30 }
 0xaa2   :  { %v663_v27 = vpop.permute.xlu2 %662 }
 0xaa3   :  { %v1710_v30 = vadd.f32 %v663_v27, %v655_v26 }
 0xaa5   :  { %1306 = vtanh.f32 %v1710_v30 }
 0xaab   :  { %v1307_v34 = vpop.eup %1306 }
 0xaac   :  { %668 = vrot.lane.b32.xlu1 %v1307_v34, %s1398_s21 }
 0xac0   :  { %v596_v42 = vpop.permute.xlu0 %595 }
 0xac1   :  { %v1715_v43 = vadd.f32 %v596_v42, %v588_v35 }
 0xac3   :  { %1308 = vtanh.f32 %v1715_v43 }
 0xac8   :  { %v742_v41 = vpop.permute.xlu0 %741 }
 0xac9   :  { %v1309_v44 = vpop.eup %1308 }
 0xaca   :  { %601 = vrot.lane.b32.xlu2 %v1309_v44, %s1398_s21 }
 0xb1e   :  { %v669_v5 = vpop.permute.xlu1 %668 }
 0xb1f   :  { %v671_v47 = vmul.f32 %v669_v5, %v652_v17 }
 0xb21   :  { %673 = vrot.lane.b32.xlu2 %v671_v47, %s1399_s22  ;;  %744 = vrot.lane.b32.xlu1 %v671_v47, %s1401_s24 }
 0xb24   :  { %v602_v48 = vpop.permute.xlu2 %601 }
 0xb25   :  { %v604_v50 = vmul.f32 %v602_v48, %v585_v24 }
 0xb27   :  { %677 = vrot.lane.b32.xlu0 %v604_v50, %s1398_s21  ;;  %v1758_v50 = vld [vmem:[%s1826_s2] ss:$0 sm:$0xff]  ;;  %s1407_s2 = smov 72  }
 0xb7b   :  { %v674_v52 = vpop.permute.xlu2 %673 }
 0xb93   :  { %v745_v29 = vpop.permute.xlu1 %744 }
 0xb94   :  { %v747_v51 = vsel %vm66_vm0, %v742_v41, %v745_v29 }
 0xb95   :  { %1209 = vmatmul.msk.f32.vlgmr.msra.gmra.mxu2 %vm68_vm1, %v747_v51 }
 0xb99   :  { %v678_v53 = vpop.permute.xlu0 %677 }
 0xb9a   :  { %v680_v49 = vsel %vm133_vm6, %v674_v52, %v678_v53 }
 0xb9b   :  { %1207 = vmatmul.msk.f32.vlgmr.msra.gmra.mxu1 %vm135_vm7, %v680_v49 }
 0xc18   :  { %v701_v54 = vpop.f32.mrf.mxu1  ;;  %v768_v28 = vpop.f32.mrf.mxu2 }
 0xc19   :  { %v702_v45 = vadd.f32 %v1595_v46, %v701_v54  ;;  %v769_v55 = vadd.f32 %v1510_v8, %v768_v28 }
 0xc1b   :  { %1310 = vtanh.f32 %v702_v45  ;;  %v1208_v58 = vmul.f32 -1.442695, %v702_v45  ;;  %v1210_v61 = vmul.f32 -1.442695, %v769_v55 }
 0xc1c   :  { %1312 = vtanh.f32 %v769_v55 }
 0xc1d   :  { %1314 = vpow2.f32 %v1208_v58 }
 0xc21   :  { %v1311_v56 = vpop.eup %1310 }
 0xc22   :  { %v1313_v57 = vpop.eup %1312  ;;  %726 = vrot.lane.b32.xlu2 %v1311_v56, %s1398_s21 }
 0xc23   :  { %793 = vrot.lane.b32.xlu1 %v1313_v57, %s1398_s21  ;;  %v1315_v59 = vpop.eup %1314 }
 0xc24   :  { %v707_v60 = vadd.f32 1.0, %v1315_v59 }
 0xc26   :  { %1316 = vrcp.f32 %v707_v60  ;;  %v719_v38 = vand.u32 2147483648, %v707_v60  ;;  %vm713_vm3 = vweird.f32 %v707_v60  ;;  %v717_v39 = vand.u32 2147483647, %v707_v60 }
 0xc27   :  { %1318 = vpow2.f32 %v1210_v61 }
 0xc28   :  { %v720_v2 = vor.u32 1.1754944e-38, %v719_v38  ;;  %vm718_vm5 = vcmp.eq.f32.partialorder %v717_v39, 8.507059e+37 }
 0xc2c   :  { %v1317_v1 = vpop.eup %1316 }
 0xc2d   :  { %v709_v31 = vmul.f32 %v1317_v1, %v707_v60  ;;  %v1319_v8 = vpop.eup %1318  ;;  %vm714_vm2 = vweird.f32 %v1317_v1 }
 0xc2e   :  { %v774_v36 = vadd.f32 1.0, %v1319_v8  ;;  %vm715_vm4 = vmor %vm713_vm3, %vm714_vm2 }
 0xc2f   :  { %v710_v32 = vsub.f32 1.0, %v709_v31 }
 0xc30   :  { %1320 = vrcp.f32 %v774_v36  ;;  %v786_v10 = vand.u32 2147483648, %v774_v36  ;;  %vm780_vm9 = vweird.f32 %v774_v36  ;;  %v784_v11 = vand.u32 2147483647, %v774_v36 }
 0xc31   :  { %v711_v33 = vmul.f32 %v1317_v1, %v710_v32 }
 0xc32   :  { %v787_v13 = vor.u32 1.1754944e-38, %v786_v10  ;;  %vm785_vm11 = vcmp.eq.f32.partialorder %v784_v11, 8.507059e+37 }
 0xc33   :  { %v712_v37 = vadd.f32 %v1317_v1, %v711_v33 }
 0xc35   :  { %v716_v40 = vsel %vm715_vm4, %v1317_v1, %v712_v37 }
 0xc36   :  { %v721_v62 = vsel %vm718_vm5, %v720_v2, %v716_v40  ;;  %v1321_v63 = vpop.eup %1320 }
 0xc37   :  { %v776_v6 = vmul.f32 %v1321_v63, %v774_v36  ;;  %vm781_vm8 = vweird.f32 %v1321_v63  ;;  %v724_v18 = vmul.f32 %v721_v62, %v1715_v43 }
 0xc38   :  { %vm782_vm10 = vmor %vm780_vm9, %vm781_vm8 }
 0xc39   :  { %v777_v0 = vsub.f32 1.0, %v776_v6 }
 0xc3b   :  { %v778_v7 = vmul.f32 %v1321_v63, %v777_v0 }
 0xc3d   :  { %v779_v9 = vadd.f32 %v1321_v63, %v778_v7 }
 0xc3f   :  { %v783_v12 = vsel %vm782_vm10, %v1321_v63, %v779_v9 }
 0xc40   :  { %v788_v15 = vsel %vm785_vm11, %v787_v13, %v783_v12 }
 0xc41   :  { %v791_v22 = vmul.f32 %v788_v15, %v1710_v30 }
 0xc7c   :  { %v727_v3 = vpop.permute.xlu2 %726 }
 0xc7d   :  { %v729_v4 = vmul.f32 %v727_v3, %v721_v62 }
 0xc7f   :  { %731 = vrot.lane.b32.xlu1 %v729_v4, %s1399_s22 }
 0xc87   :  { %877 = vrot.lane.b32.xlu1 %v1734_v16, %s1406_s10 }
 0xc95   :  { %v794_v14 = vpop.permute.xlu1 %793 }
 0xc96   :  { %v796_v17 = vmul.f32 %v794_v14, %v788_v15 }
 0xc98   :  { %798 = vrot.lane.b32.xlu0 %v796_v17, %s1399_s22 }
 0xcf1   :  { %v732_v19 = vpop.permute.xlu1 %731 }
 0xcf2   :  { %v1739_v20 = vadd.f32 %v732_v19, %v724_v18 }
 0xcf4   :  { %1322 = vtanh.f32 %v1739_v20 }
 0xcf9   :  { %v878_v42 = vpop.permute.xlu1 %877 }
 0xcfa   :  { %v1323_v21 = vpop.eup %1322 }
 0xcfb   :  { %737 = vrot.lane.b32.xlu0 %v1323_v21, %s1398_s21 }
 0xd0a   :  { %v799_v23 = vpop.permute.xlu0 %798 }
 0xd0b   :  { %v1744_v24 = vadd.f32 %v799_v23, %v791_v22 }
 0xd0d   :  { %1324 = vtanh.f32 %v1744_v24 }
 0xd13   :  { %v1325_v25 = vpop.eup %1324 }
 0xd14   :  { %804 = vrot.lane.b32.xlu2 %v1325_v25, %s1398_s21 }
 0xd6d   :  { %v738_v26 = vpop.permute.xlu0 %737 }
 0xd6e   :  { %v740_v27 = vmul.f32 %v738_v26, %v721_v62  ;;  %v805_v34 = vpop.permute.xlu2 %804 }
 0xd6f   :  { %v807_v35 = vmul.f32 %v805_v34, %v788_v15 }
 0xd70   :  { %813 = vrot.lane.b32.xlu1 %v740_v27, %s1398_s21 }
 0xd71   :  { %809 = vrot.lane.b32.xlu0 %v807_v35, %s1399_s22  ;;  %880 = vrot.lane.b32.xlu2 %v807_v35, %s1401_s24 }
 0xdcb   :  { %v881_v30 = vpop.permute.xlu2 %880 }
 0xdcc   :  { %v883_v43 = vsel %vm66_vm0, %v878_v42, %v881_v30  ;;  %v1789_v30 = vld [vmem:[%s1828_s4] ss:$0 sm:$0xff] }
 0xdcd   :  { %1213 = vmatmul.msk.f32.vlgmr.msra.gmra.mxu3 %vm68_vm1, %v883_v43 }
 0xde2   :  { %v814_v44 = vpop.permute.xlu1 %813 }
 0xde3   :  { %v810_v5 = vpop.permute.xlu0 %809 }
 0xde4   :  { %v816_v47 = vsel %vm133_vm6, %v810_v5, %v814_v44 }
 0xde5   :  { %1211 = vmatmul.msk.f32.vlgmr.msrb.gmra.mxu0 %vm135_vm7, %v816_v47 }
 0xe50   :  { %v904_v48 = vpop.f32.mrf.mxu3 }
 0xe51   :  { %v905_v41 = vadd.f32 %v1758_v50, %v904_v48 }
 0xe53   :  { %1326 = vtanh.f32 %v905_v41  ;;  %v1214_v54 = vmul.f32 -1.442695, %v905_v41 }
 0xe59   :  { %v1327_v29 = vpop.eup %1326 }
 0xe5a   :  { %929 = vrot.lane.b32.xlu0 %v1327_v29, %s1398_s21 }
 0xe62   :  { %v837_v51 = vpop.f32.mrf.mxu0 }
 0xe63   :  { %v838_v52 = vadd.f32 %v1595_v46, %v837_v51 }
 0xe65   :  { %1328 = vtanh.f32 %v838_v52  ;;  %v1212_v49 = vmul.f32 -1.442695, %v838_v52 }
 0xe67   :  { %1330 = vpow2.f32 %v1212_v49 }
 0xe68   :  { %1332 = vpow2.f32 %v1214_v54 }
 0xe6b   :  { %v1329_v53 = vpop.eup %1328 }
 0xe6c   :  { %862 = vrot.lane.b32.xlu2 %v1329_v53, %s1398_s21 }
 0xe6d   :  { %v1331_v28 = vpop.eup %1330 }
 0xe6e   :  { %v843_v45 = vadd.f32 1.0, %v1331_v28  ;;  %v1333_v55 = vpop.eup %1332 }
 0xe6f   :  { %v910_v56 = vadd.f32 1.0, %v1333_v55 }
 0xe70   :  { %1334 = vrcp.f32 %v843_v45  ;;  %v855_v32 = vand.u32 2147483648, %v843_v45  ;;  %vm849_vm13 = vweird.f32 %v843_v45  ;;  %v853_v33 = vand.u32 2147483647, %v843_v45 }
 0xe71   :  { %1336 = vrcp.f32 %v910_v56  ;;  %v922_v2 = vand.u32 2147483648, %v910_v56  ;;  %vm916_vm3 = vweird.f32 %v910_v56  ;;  %v920_v62 = vand.u32 2147483647, %v910_v56 }
 0xe72   :  { %v856_v37 = vor.u32 1.1754944e-38, %v855_v32  ;;  %vm854_vm15 = vcmp.eq.f32.partialorder %v853_v33, 8.507059e+37 }
 0xe73   :  { %v923_v63 = vor.u32 1.1754944e-38, %v922_v2  ;;  %vm921_vm5 = vcmp.eq.f32.partialorder %v920_v62, 8.507059e+37 }
 0xe76   :  { %v1335_v57 = vpop.eup %1334 }
 0xe77   :  { %v845_v58 = vmul.f32 %v1335_v57, %v843_v45  ;;  %v1337_v59 = vpop.eup %1336  ;;  %vm850_vm12 = vweird.f32 %v1335_v57 }
 0xe78   :  { %v912_v1 = vmul.f32 %v1337_v59, %v910_v56  ;;  %vm851_vm14 = vmor %vm849_vm13, %vm850_vm12  ;;  %vm917_vm2 = vweird.f32 %v1337_v59 }
 0xe79   :  { %v846_v60 = vsub.f32 1.0, %v845_v58  ;;  %vm918_vm4 = vmor %vm916_vm3, %vm917_vm2  ;;  %vm1182_vm3 = vcmask 1024  }
 0xe7a   :  { %v913_v61 = vsub.f32 1.0, %v912_v1 }
 0xe7b   :  { %v847_v46 = vmul.f32 %v1335_v57, %v846_v60 }
 0xe7c   :  { %v914_v8 = vmul.f32 %v1337_v59, %v913_v61 }
 0xe7d   :  { %v848_v31 = vadd.f32 %v1335_v57, %v847_v46 }
 0xe7e   :  { %v915_v38 = vadd.f32 %v1337_v59, %v914_v8 }
 0xe7f   :  { %v852_v36 = vsel %vm851_vm14, %v1335_v57, %v848_v31 }
 0xe80   :  { %v857_v39 = vsel %vm854_vm15, %v856_v37, %v852_v36  ;;  %v919_v4 = vsel %vm918_vm4, %v1337_v59, %v915_v38 }
 0xe81   :  { %v924_v0 = vsel %vm921_vm5, %v923_v63, %v919_v4  ;;  %v860_v13 = vmul.f32 %v857_v39, %v1739_v20 }
 0xe82   :  { %v927_v9 = vmul.f32 %v924_v0, %v1744_v24 }
 0xec6   :  { %v863_v40 = vpop.permute.xlu2 %862 }
 0xec7   :  { %v865_v3 = vmul.f32 %v863_v40, %v857_v39 }
 0xec9   :  { %867 = vrot.lane.b32.xlu1 %v865_v3, %s1399_s22 }
 0xecc   :  { %v930_v6 = vpop.permute.xlu0 %929 }
 0xecd   :  { %v932_v7 = vmul.f32 %v930_v6, %v924_v0 }
 0xecf   :  { %934 = vrot.lane.b32.xlu2 %v932_v7, %s1399_s22 }
 0xf29   :  { %v935_v10 = vpop.permute.xlu2 %934 }
 0xf2a   :  { %v1767_v11 = vadd.f32 %v935_v10, %v927_v9 }
 0xf2c   :  { %1338 = vtanh.f32 %v1767_v11 }
 0xf32   :  { %v1339_v12 = vpop.eup %1338 }
 0xf33   :  { %940 = vrot.lane.b32.xlu1 %v1339_v12, %s1398_s21 }
 0xf3b   :  { %v868_v14 = vpop.permute.xlu1 %867  ;;  %1013 = vrot.lane.b32.xlu1 %v1734_v16, %s1407_s2 }
 0xf3c   :  { %v1773_v15 = vadd.f32 %v868_v14, %v860_v13 }
 0xf3e   :  { %1340 = vtanh.f32 %v1773_v15 }
 0xf44   :  { %v1341_v17 = vpop.eup %1340 }
 0xf45   :  { %873 = vrot.lane.b32.xlu0 %v1341_v17, %s1398_s21 }
 0xfa5   :  { %v941_v18 = vpop.permute.xlu1 %940 }
 0xfa6   :  { %v943_v19 = vmul.f32 %v941_v18, %v924_v0 }
 0xfa8   :  { %945 = vrot.lane.b32.xlu2 %v943_v19, %s1399_s22 }
 0xfad   :  { %v1014_v23 = vpop.permute.xlu1 %1013 }
 0xfb0   :  { %1016 = vrot.lane.b32.xlu2 %v943_v19, %s1401_s24 }
 0xfb7   :  { %v874_v21 = vpop.permute.xlu0 %873 }
 0xfb8   :  { %v876_v22 = vmul.f32 %v874_v21, %v857_v39 }
 0xfba   :  { %949 = vrot.lane.b32.xlu0 %v876_v22, %s1398_s21 }
0x1002   :  { %v946_v20 = vpop.permute.xlu2 %945 }
0x100a   :  { %v1017_v16 = vpop.permute.xlu2 %1016 }
0x100b   :  { %v1019_v24 = vsel %vm66_vm0, %v1014_v23, %v1017_v16 }
0x100c   :  { %1217 = vmatmul.msk.f32.vlgmr.msrb.gmra.mxu1 %vm68_vm1, %v1019_v24 }
0x102c   :  { %v950_v25 = vpop.permute.xlu0 %949 }
0x102d   :  { %v952_v26 = vsel %vm133_vm6, %v946_v20, %v950_v25 }
0x102e   :  { %1215 = vmatmul.msk.f32.vlgmr.msrb.gmra.mxu2 %vm135_vm7, %v952_v26 }
0x1089   :  { %v1040_v27 = vpop.f32.mrf.mxu1 }
0x108a   :  { %v1041_v34 = vadd.f32 %v1758_v50, %v1040_v27 }
0x108c   :  { %1342 = vtanh.f32 %v1041_v34  ;;  %v1218_v5 = vmul.f32 -1.442695, %v1041_v34 }
0x1092   :  { %v1343_v35 = vpop.eup %1342 }
0x1093   :  { %1065 = vrot.lane.b32.xlu1 %v1343_v35, %s1398_s21 }
0x10b1   :  { %v973_v42 = vpop.f32.mrf.mxu2 }
0x10b2   :  { %v974_v43 = vadd.f32 %v1789_v30, %v973_v42 }
0x10b4   :  { %1344 = vtanh.f32 %v974_v43  ;;  %v1216_v49 = vmul.f32 -1.442695, %v974_v43 }
0x10b5   :  { %1346 = vpow2.f32 %v1218_v5 }
0x10ba   :  { %v1345_v44 = vpop.eup %1344 }
0x10bb   :  { %998 = vrot.lane.b32.xlu0 %v1345_v44, %s1398_s21  ;;  %v1347_v47 = vpop.eup %1346 }
0x10bc   :  { %v1046_v48 = vadd.f32 1.0, %v1347_v47 }
0x10be   :  { %1348 = vrcp.f32 %v1046_v48  ;;  %v1058_v53 = vand.u32 2147483648, %v1046_v48  ;;  %vm1052_vm1 = vweird.f32 %v1046_v48  ;;  %v1056_v54 = vand.u32 2147483647, %v1046_v48 }
0x10bf   :  { %1350 = vpow2.f32 %v1216_v49 }
0x10c0   :  { %v1059_v45 = vor.u32 1.1754944e-38, %v1058_v53  ;;  %vm1057_vm9 = vcmp.eq.f32.partialorder %v1056_v54, 8.507059e+37  ;;  %v1237_v54 = vld [vmem:[#allocation2] ss:$0 sm:$0xff] }
0x10c4   :  { %v1349_v50 = vpop.eup %1348 }
0x10c5   :  { %v1048_v41 = vmul.f32 %v1349_v50, %v1046_v48  ;;  %vm1053_vm0 = vweird.f32 %v1349_v50  ;;  %v1351_v58 = vpop.eup %1350 }
0x10c6   :  { %vm1054_vm8 = vmor %vm1052_vm1, %vm1053_vm0  ;;  %v979_v59 = vadd.f32 1.0, %v1351_v58 }
0x10c7   :  { %v1049_v29 = vsub.f32 1.0, %v1048_v41  ;;  %v1151_v41 = vld [vmem:[%s1829_s5 + $0x10] sm:$0xff] }
0x10c8   :  { %1352 = vrcp.f32 %v979_v59  ;;  %v991_v32 = vand.u32 2147483648, %v979_v59  ;;  %vm985_vm11 = vweird.f32 %v979_v59  ;;  %v989_v33 = vand.u32 2147483647, %v979_v59 }
0x10c9   :  { %v1050_v51 = vmul.f32 %v1349_v50, %v1049_v29  ;;  %v1150_v29 = vld [vmem:[%s1829_s5 + $0x8] sm:$0xff] }
0x10ca   :  { %v992_v36 = vor.u32 1.1754944e-38, %v991_v32  ;;  %vm990_vm13 = vcmp.eq.f32.partialorder %v989_v33, 8.507059e+37 }
0x10cb   :  { %v1051_v52 = vadd.f32 %v1349_v50, %v1050_v51  ;;  %v1149_v51 = vld [vmem:[%s1829_s5] sm:$0xff] }
0x10cd   :  { %v1055_v28 = vsel %vm1054_vm8, %v1349_v50, %v1051_v52  ;;  %v1152_v50 = vld [vmem:[%s1829_s5 + $0x18] sm:$0xff] }
0x10ce   :  { %v1060_v56 = vsel %vm1057_vm9, %v1059_v45, %v1055_v28  ;;  %v1353_v60 = vpop.eup %1352  ;;  %1174 = vmatpush.msra.mxu0 %v1152_v50 }
0x10cf   :  { %v981_v1 = vmul.f32 %v1353_v60, %v979_v59  ;;  %vm986_vm10 = vweird.f32 %v1353_v60  ;;  %v1063_v40 = vmul.f32 %v1060_v56, %v1767_v11 }
0x10d0   :  { %vm987_vm12 = vmor %vm985_vm11, %vm986_vm10  ;;  %1175 = vmatpush.msra.mxu0 %v1151_v41 }
0x10d1   :  { %v982_v46 = vsub.f32 1.0, %v981_v1 }
0x10d2   :  { %1176 = vmatpush.msra.mxu0 %v1150_v29 }
0x10d3   :  { %v983_v61 = vmul.f32 %v1353_v60, %v982_v46 }
0x10d4   :  { %1177 = vmatpush.msra.mxu0 %v1149_v51 }
0x10d5   :  { %v984_v31 = vadd.f32 %v1353_v60, %v983_v61 }
0x10d7   :  { %v988_v8 = vsel %vm987_vm12, %v1353_v60, %v984_v31 }
0x10d8   :  { %v993_v38 = vsel %vm990_vm13, %v992_v36, %v988_v8 }
0x10d9   :  { %v996_v4 = vmul.f32 %v993_v38, %v1773_v15 }
0x1105   :  { %v1066_v55 = vpop.permute.xlu1 %1065 }
0x1106   :  { %v1068_v57 = vmul.f32 %v1066_v55, %v1060_v56 }
0x1108   :  { %1070 = vrot.lane.b32.xlu0 %v1068_v57, %s1399_s22 }
0x112d   :  { %v999_v37 = vpop.permute.xlu0 %998 }
0x112e   :  { %v1001_v39 = vmul.f32 %v999_v37, %v993_v38 }
0x1130   :  { %1003 = vrot.lane.b32.xlu2 %v1001_v39, %s1399_s22 }
0x117a   :  { %v1071_v2 = vpop.permute.xlu0 %1070 }
0x117b   :  { %v1073_v3 = vadd.f32 %v1071_v2, %v1063_v40 }
0x117d   :  { %1354 = vtanh.f32 %v1073_v3 }
0x1183   :  { %v1355_v62 = vpop.eup %1354 }
0x1184   :  { %1076 = vrot.lane.b32.xlu2 %v1355_v62, %s1398_s21 }
0x118a   :  { %v1004_v63 = vpop.permute.xlu2 %1003 }
0x118b   :  { %v1006_v6 = vadd.f32 %v1004_v63, %v996_v4 }
0x118d   :  { %1356 = vtanh.f32 %v1006_v6 }
0x1193   :  { %v1357_v0 = vpop.eup %1356 }
0x1194   :  { %1009 = vrot.lane.b32.xlu1 %v1357_v0, %s1398_s21 }
0x11de   :  { %v1077_v7 = vpop.permute.xlu2 %1076 }
0x11df   :  { %v1079_v9 = vmul.f32 %v1077_v7, %v1060_v56 }
0x11e1   :  { %1081 = vrot.lane.b32.xlu0 %v1079_v9, %s1399_s22 }
0x1206   :  { %v1010_v10 = vpop.permute.xlu1 %1009 }
0x1207   :  { %v1012_v11 = vmul.f32 %v1010_v10, %v993_v38 }
0x1209   :  { %1085 = vrot.lane.b32.xlu1 %v1012_v11, %s1398_s21 }
0x1253   :  { %v1082_v12 = vpop.permute.xlu0 %1081 }
0x127b   :  { %v1086_v13 = vpop.permute.xlu1 %1085 }
0x127c   :  { %v1088_v14 = vsel %vm133_vm6, %v1082_v12, %v1086_v13 }
0x127d   :  { %1219 = vmatmul.msk.f32.vlgmr.msrb.gmra.mxu3 %vm135_vm7, %v1088_v14 }
0x1300   :  { %v1109_v15 = vpop.f32.mrf.mxu3 }
0x1301   :  { %v1110_v17 = vadd.f32 %v1789_v30, %v1109_v15 }
0x1303   :  { %1358 = vtanh.f32 %v1110_v17  ;;  %v1220_v19 = vmul.f32 -1.442695, %v1110_v17 }
0x1305   :  { %1360 = vpow2.f32 %v1220_v19 }
0x1309   :  { %v1359_v18 = vpop.eup %1358 }
0x130a   :  { %1134 = vrot.lane.b32.xlu2 %v1359_v18, %s1398_s21 }
0x130b   :  { %v1361_v21 = vpop.eup %1360 }
0x130c   :  { %v1115_v22 = vadd.f32 1.0, %v1361_v21 }
0x130e   :  { %1362 = vrcp.f32 %v1115_v22  ;;  %v1127_v26 = vand.u32 2147483648, %v1115_v22  ;;  %vm1121_vm7 = vweird.f32 %v1115_v22  ;;  %v1125_v27 = vand.u32 2147483647, %v1115_v22 }
0x1310   :  { %v1128_v35 = vor.u32 1.1754944e-38, %v1127_v26  ;;  %vm1126_vm2 = vcmp.eq.f32.partialorder %v1125_v27, 8.507059e+37 }
0x1314   :  { %v1363_v20 = vpop.eup %1362 }
0x1315   :  { %v1117_v23 = vmul.f32 %v1363_v20, %v1115_v22  ;;  %vm1122_vm14 = vweird.f32 %v1363_v20 }
0x1316   :  { %vm1123_vm15 = vmor %vm1121_vm7, %vm1122_vm14 }
0x1317   :  { %v1118_v16 = vsub.f32 1.0, %v1117_v23 }
0x1319   :  { %v1119_v24 = vmul.f32 %v1363_v20, %v1118_v16 }
0x131b   :  { %v1120_v25 = vadd.f32 %v1363_v20, %v1119_v24 }
0x131d   :  { %v1124_v34 = vsel %vm1123_vm15, %v1363_v20, %v1120_v25 }
0x131e   :  { %v1129_v30 = vsel %vm1126_vm2, %v1128_v35, %v1124_v34 }
0x131f   :  { %v1132_v44 = vmul.f32 %v1129_v30, %v1006_v6 }
0x1364   :  { %v1135_v42 = vpop.permute.xlu2 %1134 }
0x1365   :  { %v1137_v43 = vmul.f32 %v1135_v42, %v1129_v30 }
0x1367   :  { %1139 = vrot.lane.b32.xlu0 %v1137_v43, %s1399_s22 }
0x13d9   :  { %v1140_v5 = vpop.permute.xlu0 %1139 }
0x13da   :  { %v1142_v47 = vadd.f32 %v1140_v5, %v1132_v44 }
0x13dc   :  { %1364 = vtanh.f32 %v1142_v47 }
0x13e2   :  { %v1365_v48 = vpop.eup %1364 }
0x13e3   :  { %1145 = vrot.lane.b32.xlu1 %v1365_v48, %s1398_s21 }
0x1455   :  { %v1146_v52 = vpop.permute.xlu1 %1145 }
0x1456   :  { %v1148_v53 = vmul.f32 %v1146_v52, %v1129_v30 }
0x1458   :  { %1158 = vrot.lane.b32.xlu2 %v1148_v53, %s1399_s22 }
0x14b2   :  { %v1159_v49 = vpop.permute.xlu2 %1158 }
0x14b3   :  { %1221 = vmatmul.msk.f32.vlgmr.msra.gmra.mxu0 %vm133_vm6, %v1159_v49 }
0x1530   :  { %v1179_v28 = vpop.f32.mrf.mxu0 }
0x1531   :  { %v1180_v45 = vadd.f32 %v1237_v54, %v1179_v28 }
0x1533   :  { %1183 = vst.msk [vmem:[%s1831_s7] sm:$0x3] %vm1182_vm3, %v1180_v45 }
0x1534   :  { %1188 = vsyncpa [#allocation4], 1 }

</bundles_post_ra>
